<compile_context>
chip_gen: v5e
topology: v5e:2x2
jax: 0.10.0
libtpu: 0.0.40
codegen_flags: <defaults>
</compile_context>

<pallas_src>
import functools

import jax
import jax.numpy as jnp
from jax.experimental import pallas as pl
from jax.experimental.pallas import tpu as pltpu

NUM_INPUT = 7
IN_PAD = 8            # pad 7 -> 8 input features for sublane alignment
NUM_NEURONS = 128
LANE = 128


def _round_up(x, m):
    return pl.cdiv(x, m) * m


def _default_tanh_dtype():
    # bf16 EUP exists on v6e/v7x; keep f32 elsewhere (v5e has no bf16 VPU/EUP).
    try:
        kind = jax.devices()[0].device_kind.lower()
    except Exception:
        return jnp.float32
    return jnp.bfloat16 if ("v6" in kind or "v7" in kind) else jnp.float32


def mlp_kernel(x_ref, w1_ref, b1_ref, w2_ref, b2_ref, w3_ref, b3_ref,
               w7_ref, b7_ref, o_ref, *, tanh_dtype):
    # x_ref : (IN_PAD, bt) f32   -- batch on the lane axis
    # w*_ref: (out, in)    bf16  -- PyTorch weight layout, MXU operands
    # b*_ref: (out, 1)     f32
    # w7_ref: (128, 1)     f32 ; b7_ref: (1,) f32 in SMEM
    # o_ref : (1, bt)      f32   -- lane-dense output row
    x = x_ref[...].astype(jnp.bfloat16)

    h = jnp.dot(w1_ref[...], x, preferred_element_type=jnp.float32) + b1_ref[...]
    h = jnp.maximum(h, 0.0).astype(jnp.bfloat16)                     # relu

    h = jnp.dot(w2_ref[...], h, preferred_element_type=jnp.float32) + b2_ref[...]
    h = jnp.tanh(h.astype(tanh_dtype)).astype(jnp.bfloat16)          # tanh

    h = jnp.dot(w3_ref[...], h, preferred_element_type=jnp.float32) + b3_ref[...]
    h = jnp.tanh(h.astype(tanh_dtype)).astype(jnp.float32)           # tanh

    # fc7 (128 -> 1): VPU multiply + sublane reduce instead of an N=1 matmul;
    # result is already lane-dense (1, bt).
    y = jnp.sum(h * w7_ref[...], axis=0, keepdims=True) + b7_ref[0]
    o_ref[...] = jnp.maximum(y, 0.0).astype(o_ref.dtype)             # relu


def net_forward(x, params, *, batch_tile=512, tanh_dtype=None):
    """x: (B, NUM_INPUT) float32 -> (B, 1) float32."""
    w1, b1, w2, b2, w3, b3, w7, b7 = params
    B, D = x.shape
    assert D == NUM_INPUT
    assert batch_tile % LANE == 0
    if tanh_dtype is None:
        tanh_dtype = _default_tanh_dtype()

    # Tile choice: as large as batch_tile allows; ragged B handled by padding.
    bt = min(batch_tile, _round_up(B, LANE))
    b_pad = _round_up(B, bt)
    num_tiles = b_pad // bt

    # Feature-major, zero-padded input: (IN_PAD, b_pad).
    x_t = jnp.zeros((IN_PAD, b_pad), jnp.float32).at[:NUM_INPUT, :B].set(
        x.astype(jnp.float32).T)

    full = lambda a: pl.BlockSpec(a.shape, lambda i: (0, 0))

    out = pl.pallas_call(
        functools.partial(mlp_kernel, tanh_dtype=tanh_dtype),
        out_shape=jax.ShapeDtypeStruct((1, b_pad), jnp.float32),
        grid=(num_tiles,),
        in_specs=[
            pl.BlockSpec((IN_PAD, bt), lambda i: (0, i)),        # x tile
            full(w1), full(b1),
            full(w2), full(b2),
            full(w3), full(b3),
            full(w7),
            pl.BlockSpec(memory_space=pltpu.MemorySpace.SMEM),   # b7 scalar
        ],
        out_specs=pl.BlockSpec((1, bt), lambda i: (0, i)),       # lane-dense
        compiler_params=pltpu.CompilerParams(
            dimension_semantics=("parallel",)),
    )(x_t, w1, b1, w2, b2, w3, b3, w7, b7)

    return out[0, :B].reshape(B, 1)


def init_params(key):
    """PyTorch-style Linear init (uniform +-1/sqrt(fan_in)), stored kernel-ready:
       hidden weights (out, in) bf16 (w1 zero-padded to IN_PAD inputs),
       biases (out, 1) f32, fc7 weight (128, 1) f32, fc7 bias (1,) f32."""
    def linear(key, fan_in, fan_out):
        kw, kb = jax.random.split(key)
        bound = 1.0 / (fan_in ** 0.5)
        w = jax.random.uniform(kw, (fan_out, fan_in), jnp.float32, -bound, bound)
        b = jax.random.uniform(kb, (fan_out,), jnp.float32, -bound, bound)
        return w, b

    k1, k2, k3, k7 = jax.random.split(key, 4)
    w1, b1 = linear(k1, NUM_INPUT, NUM_NEURONS)
    w2, b2 = linear(k2, NUM_NEURONS, NUM_NEURONS)
    w3, b3 = linear(k3, NUM_NEURONS, NUM_NEURONS)
    w7, b7 = linear(k7, NUM_NEURONS, 1)

    w1k = (jnp.zeros((NUM_NEURONS, IN_PAD), jnp.float32)
           .at[:, :NUM_INPUT].set(w1).astype(jnp.bfloat16))
    return (w1k, b1.reshape(-1, 1),
            w2.astype(jnp.bfloat16), b2.reshape(-1, 1),
            w3.astype(jnp.bfloat16), b3.reshape(-1, 1),
            w7.reshape(NUM_NEURONS, 1), b7.reshape(1))


def net_forward_ref(x, params):
    """Pure-JAX f32 reference using the same (bf16-stored) parameters."""
    w1, b1, w2, b2, w3, b3, w7, b7 = params
    w1f = w1.astype(jnp.float32)[:, :NUM_INPUT]
    h = jnp.maximum(x @ w1f.T + b1[:, 0], 0.0)
    h = jnp.tanh(h @ w2.astype(jnp.float32).T + b2[:, 0])
    h = jnp.tanh(h @ w3.astype(jnp.float32).T + b3[:, 0])
    return jnp.maximum(h @ w7 + b7, 0.0)


if __name__ == "__main__":
    key = jax.random.PRNGKey(0)
    kx, kp = jax.random.split(key)

    B = 1000  # ragged on purpose: padded to 1024 -> 2 grid steps of 512
    x = jax.random.normal(kx, (B, NUM_INPUT), jnp.float32)
    params = init_params(kp)

    y = jax.block_until_ready(net_forward(x, params))
    y_ref = net_forward_ref(x, params)

    assert y.shape == (B, 1)
    assert jnp.allclose(y, y_ref, atol=2e-2, rtol=2e-2), (
        "mismatch vs reference: max |d| = "
        f"{float(jnp.max(jnp.abs(y - y_ref)))}")

    # TODO(synk): Net.get_loss (per-sample autograd arbitrage / L2 penalties)
    # is training logic, not part of forward(); not implemented as a kernel.
    print("KERNEL_OK")
</pallas_src>

<mosaic_0001>
module attributes {stable_mosaic.version = 11 : i64} {
  func.func @mlp_kernel(%arg0: i32, %arg1: memref<8x512xf32, #tpu.memory_space<vmem>>, %arg2: memref<128x8xbf16, #tpu.memory_space<vmem>>, %arg3: memref<128x1xf32, #tpu.memory_space<vmem>>, %arg4: memref<128x128xbf16, #tpu.memory_space<vmem>>, %arg5: memref<128x1xf32, #tpu.memory_space<vmem>>, %arg6: memref<128x128xbf16, #tpu.memory_space<vmem>>, %arg7: memref<128x1xf32, #tpu.memory_space<vmem>>, %arg8: memref<128x1xf32, #tpu.memory_space<vmem>>, %arg9: memref<1xf32, #tpu.memory_space<smem>>, %arg10: memref<1x512xf32, #tpu.memory_space<vmem>>) attributes {dimension_semantics = [#tpu.dimension_semantics<parallel>], iteration_bounds = array<i64: 2>, scalar_prefetch = 0 : i64, scratch_operands = 0 : i64, tpu.core_type = #tpu.core_type<tc>, window_params = [{transform_indices = @transform_0, window_bounds = array<i64: 8, 512>}, {pipeline_mode = #tpu.pipeline_mode<synchronous>, transform_indices = @transform_1, window_bounds = array<i64: 128, 8>}, {pipeline_mode = #tpu.pipeline_mode<synchronous>, transform_indices = @transform_2, window_bounds = array<i64: 128, 1>}, {pipeline_mode = #tpu.pipeline_mode<synchronous>, transform_indices = @transform_3, window_bounds = array<i64: 128, 128>}, {pipeline_mode = #tpu.pipeline_mode<synchronous>, transform_indices = @transform_4, window_bounds = array<i64: 128, 1>}, {pipeline_mode = #tpu.pipeline_mode<synchronous>, transform_indices = @transform_5, window_bounds = array<i64: 128, 128>}, {pipeline_mode = #tpu.pipeline_mode<synchronous>, transform_indices = @transform_6, window_bounds = array<i64: 128, 1>}, {pipeline_mode = #tpu.pipeline_mode<synchronous>, transform_indices = @transform_7, window_bounds = array<i64: 128, 1>}, {transform_indices = @transform_8, window_bounds = array<i64: 1>}, {transform_indices = @transform_9, window_bounds = array<i64: 1, 512>}]} {
    %c0 = arith.constant 0 : index
    %c0_0 = arith.constant 0 : index
    %0 = vector.load %arg1[%c0, %c0_0] : memref<8x512xf32, #tpu.memory_space<vmem>>, vector<8x512xf32>
    %1 = arith.truncf %0 : vector<8x512xf32> to vector<8x512xbf16>
    %c0_1 = arith.constant 0 : index
    %c0_2 = arith.constant 0 : index
    %2 = vector.load %arg2[%c0_1, %c0_2] : memref<128x8xbf16, #tpu.memory_space<vmem>>, vector<128x8xbf16>
    %cst = arith.constant dense<0.000000e+00> : vector<128x512xf32>
    %3 = tpu.matmul %2, %1, %cst {dimension_numbers = #tpu.dot_dimension_numbers<[1], [0], [0], [1], [0, 0, 1, 1], [], []>} : vector<128x8xbf16>, vector<8x512xbf16>, vector<128x512xf32> -> vector<128x512xf32>
    %c0_3 = arith.constant 0 : index
    %c0_4 = arith.constant 0 : index
    %4 = vector.load %arg3[%c0_3, %c0_4] : memref<128x1xf32, #tpu.memory_space<vmem>>, vector<128x1xf32>
    %5 = vector.broadcast %4 : vector<128x1xf32> to vector<128x512xf32>
    %6 = arith.addf %3, %5 : vector<128x512xf32>
    %cst_5 = arith.constant 0.000000e+00 : f32
    %7 = vector.broadcast %cst_5 : f32 to vector<128x512xf32>
    %8 = arith.maximumf %6, %7 : vector<128x512xf32>
    %9 = arith.truncf %8 : vector<128x512xf32> to vector<128x512xbf16>
    %c0_6 = arith.constant 0 : index
    %c0_7 = arith.constant 0 : index
    %10 = vector.load %arg4[%c0_6, %c0_7] : memref<128x128xbf16, #tpu.memory_space<vmem>>, vector<128x128xbf16>
    %cst_8 = arith.constant dense<0.000000e+00> : vector<128x512xf32>
    %11 = tpu.matmul %10, %9, %cst_8 {dimension_numbers = #tpu.dot_dimension_numbers<[1], [0], [0], [1], [0, 0, 1, 1], [], []>} : vector<128x128xbf16>, vector<128x512xbf16>, vector<128x512xf32> -> vector<128x512xf32>
    %c0_9 = arith.constant 0 : index
    %c0_10 = arith.constant 0 : index
    %12 = vector.load %arg5[%c0_9, %c0_10] : memref<128x1xf32, #tpu.memory_space<vmem>>, vector<128x1xf32>
    %13 = vector.broadcast %12 : vector<128x1xf32> to vector<128x512xf32>
    %14 = arith.addf %11, %13 : vector<128x512xf32>
    %15 = math.tanh %14 : vector<128x512xf32>
    %16 = arith.truncf %15 : vector<128x512xf32> to vector<128x512xbf16>
    %c0_11 = arith.constant 0 : index
    %c0_12 = arith.constant 0 : index
    %17 = vector.load %arg6[%c0_11, %c0_12] : memref<128x128xbf16, #tpu.memory_space<vmem>>, vector<128x128xbf16>
    %cst_13 = arith.constant dense<0.000000e+00> : vector<128x512xf32>
    %18 = tpu.matmul %17, %16, %cst_13 {dimension_numbers = #tpu.dot_dimension_numbers<[1], [0], [0], [1], [0, 0, 1, 1], [], []>} : vector<128x128xbf16>, vector<128x512xbf16>, vector<128x512xf32> -> vector<128x512xf32>
    %c0_14 = arith.constant 0 : index
    %c0_15 = arith.constant 0 : index
    %19 = vector.load %arg7[%c0_14, %c0_15] : memref<128x1xf32, #tpu.memory_space<vmem>>, vector<128x1xf32>
    %20 = vector.broadcast %19 : vector<128x1xf32> to vector<128x512xf32>
    %21 = arith.addf %18, %20 : vector<128x512xf32>
    %22 = math.tanh %21 : vector<128x512xf32>
    %c0_16 = arith.constant 0 : index
    %c0_17 = arith.constant 0 : index
    %23 = vector.load %arg8[%c0_16, %c0_17] : memref<128x1xf32, #tpu.memory_space<vmem>>, vector<128x1xf32>
    %24 = vector.broadcast %23 : vector<128x1xf32> to vector<128x512xf32>
    %25 = arith.mulf %22, %24 : vector<128x512xf32>
    %cst_18 = arith.constant dense<0.000000e+00> : vector<512xf32>
    %26 = vector.multi_reduction <add>, %25, %cst_18 [0] : vector<128x512xf32> to vector<512xf32>
    %27 = vector.shape_cast %26 : vector<512xf32> to vector<1x512xf32>
    %c0_19 = arith.constant 0 : index
    %28 = memref.load %arg9[%c0_19] : memref<1xf32, #tpu.memory_space<smem>>
    %29 = vector.broadcast %28 : f32 to vector<1x512xf32>
    %30 = arith.addf %27, %29 : vector<1x512xf32>
    %cst_20 = arith.constant 0.000000e+00 : f32
    %31 = vector.broadcast %cst_20 : f32 to vector<1x512xf32>
    %32 = arith.maximumf %30, %31 : vector<1x512xf32>
    %c0_21 = arith.constant 0 : index
    %c0_22 = arith.constant 0 : index
    %33 = vector.load %arg10[%c0_21, %c0_22] : memref<1x512xf32, #tpu.memory_space<vmem>>, vector<1x512xf32>
    tpu.vector_store %arg10[%c0_21, %c0_22], %32 {strides = array<i32>} : memref<1x512xf32, #tpu.memory_space<vmem>>, vector<1x512xf32>,
    return
  }
  func.func @transform_0(%arg0: i32) -> (i32, i32) {
    %c0_i32 = arith.constant 0 : i32
    %c0_i32_0 = arith.constant 0 : i32
    return %c0_i32, %arg0 : i32, i32
  }
  func.func @transform_1(%arg0: i32) -> (i32, i32) {
    %c0_i32 = arith.constant 0 : i32
    %c0_i32_0 = arith.constant 0 : i32
    %c0_i32_1 = arith.constant 0 : i32
    return %c0_i32, %c0_i32_0 : i32, i32
  }
  func.func @transform_2(%arg0: i32) -> (i32, i32) {
    %c0_i32 = arith.constant 0 : i32
    %c0_i32_0 = arith.constant 0 : i32
    %c0_i32_1 = arith.constant 0 : i32
    return %c0_i32, %c0_i32_0 : i32, i32
  }
  func.func @transform_3(%arg0: i32) -> (i32, i32) {
    %c0_i32 = arith.constant 0 : i32
    %c0_i32_0 = arith.constant 0 : i32
    %c0_i32_1 = arith.constant 0 : i32
    return %c0_i32, %c0_i32_0 : i32, i32
  }
  func.func @transform_4(%arg0: i32) -> (i32, i32) {
    %c0_i32 = arith.constant 0 : i32
    %c0_i32_0 = arith.constant 0 : i32
    %c0_i32_1 = arith.constant 0 : i32
    return %c0_i32, %c0_i32_0 : i32, i32
  }
  func.func @transform_5(%arg0: i32) -> (i32, i32) {
    %c0_i32 = arith.constant 0 : i32
    %c0_i32_0 = arith.constant 0 : i32
    %c0_i32_1 = arith.constant 0 : i32
    return %c0_i32, %c0_i32_0 : i32, i32
  }
  func.func @transform_6(%arg0: i32) -> (i32, i32) {
    %c0_i32 = arith.constant 0 : i32
    %c0_i32_0 = arith.constant 0 : i32
    %c0_i32_1 = arith.constant 0 : i32
    return %c0_i32, %c0_i32_0 : i32, i32
  }
  func.func @transform_7(%arg0: i32) -> (i32, i32) {
    %c0_i32 = arith.constant 0 : i32
    %c0_i32_0 = arith.constant 0 : i32
    %c0_i32_1 = arith.constant 0 : i32
    return %c0_i32, %c0_i32_0 : i32, i32
  }
  func.func @transform_8(%arg0: i32) -> i32 {
    %c0_i32 = arith.constant 0 : i32
    %c0_i32_0 = arith.constant 0 : i32
    return %c0_i32 : i32
  }
  func.func @transform_9(%arg0: i32) -> (i32, i32) {
    %c0_i32 = arith.constant 0 : i32
    %c0_i32_0 = arith.constant 0 : i32
    return %c0_i32, %arg0 : i32, i32
  }
}

</mosaic_0001>

<bundles_post_ra>
// kernel: tpu_custom_call.1
= control target key start
LH: loop header
LB: loop body
LE: loop exit
PB: predicated region body
PF: predicated region fallthrough
CT: control target
= control target key end

     0   :  { %s3841_s0 = inlined_call_operand.vmem [shape: f32[8,1024], index: 0, kind: input, shape index: {}]   ;;  %s3842_s1 = inlined_call_operand.vmem [shape: bf16[128,8], index: 1, kind: input, shape index: {}]   ;;  %s3843_s2 = inlined_call_operand.vmem [shape: f32[128,1], index: 2, kind: input, shape index: {}]   ;;  %s3844_s3 = inlined_call_operand.vmem [shape: bf16[128,128], index: 3, kind: input, shape index: {}]   ;;  %s3845_s4 = inlined_call_operand.vmem [shape: f32[128,1], index: 4, kind: input, shape index: {}]   ;;  %s3846_s5 = inlined_call_operand.vmem [shape: bf16[128,128], index: 5, kind: input, shape index: {}]   ;;  %s3847_s6 = inlined_call_operand.vmem [shape: f32[128,1], index: 6, kind: input, shape index: {}]   ;;  %s3848_s7 = inlined_call_operand.vmem [shape: f32[128,1], index: 7, kind: input, shape index: {}]   ;;  %s3849_s8 = inlined_call_operand.<no memory space> [shape: f32[1], index: 8, kind: input, shape index: {}]   ;;  %s3850_s9 = inlined_call_operand.hbm [shape: f32[1,1024], index: 9, kind: output, shape index: {}]  }
   0x1   :  { %14 = sst [smem:[#allocation2]] %s3849_s8 }
   0x2   :  { %15 = vsyncpa [#allocation4], 0 }
   0x3   :  { %17 = vsyncpa [#allocation4 + $0x1], 0  ;;  %s2626_s11 = smov 0   ;;  %s2628_s12 = smov 0  }
   0x4   :  { %s2630_s13 = smov 0   ;;  %s2632_s14 = smov 0  }
   0x5 LB: > { %s2045_s8 = sadd.s32 4294967295, %s2570_s14   ;;  %s2046_s15 = sadd.s32 4294967294, %s2570_s14   ;;  %s2570_s14 = sphi %s2632_s14, %s3974_s14   ;;  %s2566_s13 = sphi %s2630_s13, %s3973_s13   ;;  %s2562_s12 = sphi %s2628_s12, %s3972_s12   ;;  %s2558_s11 = sphi %s2626_s11, %s3971_s11  }
   0x6   : > { %s2649_s16 = sadd.s32 1, %s2570_s14   ;;  %s224_s17 = sadd.s32 1, %s2566_s13 }
   0x7   : > { %s221_s18 = ssub.s32 %s2570_s14, %s2649_s16  ;;  %p234_p0 = scmp.ne.s32.totalorder %s2566_s13, %s2562_s12 }
   0x8   : > { %p222_p1 = scmp.eq.s32.totalorder %s221_s18, 0  ;;  %p235_p2 = scmp.eq.s32.totalorder %s2045_s8, 1 }
   0x9   : > { %p240_p3 = scmp.ne.s32.totalorder %s2562_s12, %s2558_s11  ;;  %p241_p4 = scmp.eq.s32.totalorder %s2046_s15, 1 }
   0xa   : > { %s2659_s19 = scalar_select %p222_p1, %s2566_s13, %s224_s17  }
   0xb   : > { %p2661_p5 = por %p235_p2, %p234_p0  ;;  %p2665_p6 = por %p241_p4, %p240_p3 }
   0xc   : > { %p2049_p7 = scmp.ge.s32.totalorder %s2570_s14, 1  ;;  %p292_p8 = scmp.lt.s32.totalorder %s2570_s14, 3 }
   0xe   : > { %p293_p9 = pnand %p2049_p7, %p292_p8 }
  0x10   : > { %296 = sbr.rel (%p293_p9) target bundleno = 908 (0x38c), region = 56 }
  0x15   : > { %v374_v0 = vld [vmem:[%s3843_s2 + $0x70] sm:$0xff]  ;;  %v372_v1 = vld [vmem:[%s3843_s2 + $0x60] sm:$0xff]  ;;  %s2677_s26 = sshll.u32 %s2045_s8, 2  ;;  %v2572_v2 = vmov 0   ;;  %v375_v4 = vld [vmem:[%s3843_s2 + $0x78] sm:$0xff]  ;;  %vm521_vm0 = vcmask 1043456  }
  0x16   : > { %2250 = vset.pattern.permute.xlu1 %v2572_v2  ;;  %2249 = vset.pattern.permute.xlu0 %v2572_v2  ;;  %v370_v3 = vld [vmem:[%s3843_s2 + $0x50] sm:$0xff]  ;;  %p329_p10 = scmp.lt.s32.totalorder %s2677_s26, 7  ;;  %v373_v5 = vld [vmem:[%s3843_s2 + $0x68] sm:$0xff]  ;;  %v2185_v17 = vld [vmem:[%s3842_s1] sm:$0xff]  ;;  %vm496_vm1 = vcmask 64512   ;;  %s3793_s18 = sld [smem:[#allocation2]] }
  0x17   : > { %448 = vperm.xlu0 %2249, %v374_v0   ;;  %438 = vperm.xlu1 %2250, %v372_v1   ;;  %v371_v18 = vld [vmem:[%s3843_s2 + $0x58] sm:$0xff]  ;;  %v369_v20 = vld [vmem:[%s3843_s2 + $0x48] sm:$0xff]  ;;  %v368_v21 = vld [vmem:[%s3843_s2 + $0x40] sm:$0xff]  ;;  %vm1959_vm2 = vcmask 1040384   ;;  %s325_s22 = sand.u32 1, %s2562_s12   ;;  %s1982_s27 = scalar_lea.hbm %s3850_s9, %s2677_s26  ;;  %vm1961_vm3 = vcmask 1042434  }
  0x18   : > { %2251 = vset.pattern.permute.xlu2 %v2572_v2  ;;  %s330_s29 = scalar_select %p329_p10, %s2677_s26, 7  ;;  %v366_v22 = vld [vmem:[%s3843_s2 + $0x30] sm:$0xff]  ;;  %v367_v23 = vld [vmem:[%s3843_s2 + $0x38] sm:$0xff]  ;;  %v364_v24 = vld [vmem:[%s3843_s2 + $0x20] sm:$0xff]  ;;  %vm1963_vm4 = vcmask 1041408  }
  0x19   : > { %428 = vperm.xlu2 %2251, %v370_v3   ;;  %v2186_v25 = vld [vmem:[%s3842_s1 + $0x8] sm:$0xff]  ;;  %v363_v27 = vld [vmem:[%s3843_s2 + $0x18] sm:$0xff]  ;;  %v362_v28 = vld [vmem:[%s3843_s2 + $0x10] sm:$0xff]  ;;  %s1972_s10 = scalar_lea.sflag [#allocation4], %s325_s22 }
  0x1a   : > { %s2052_s30 = sshll.u32 %s330_s29, 3  ;;  %v365_v26 = vld [vmem:[%s3843_s2 + $0x28] sm:$0xff]  ;;  %v360_v29 = vld [vmem:[%s3843_s2] sm:$0xff]  ;;  %v856_v30 = vld [vmem:[%s3845_s4 + $0x70] sm:$0xff] }
  0x1b   : > { %s332_s23 = scalar_lea.vmem %s3841_s0, %s2052_s30  ;;  %v361_v31 = vld [vmem:[%s3843_s2 + $0x8] sm:$0xff]  ;;  %v2187_v32 = vld [vmem:[%s3842_s1 + $0x10] sm:$0xff]  ;;  %v857_v33 = vld [vmem:[%s3845_s4 + $0x78] sm:$0xff]  ;;  %s1986_s30 = sshll.u32 %s1982_s27, 4  ;;  %s1987_s30 = int_to_ptr.hbm [resolvable:$true] %s1986_s30 }
  0x1c   : > { %v336_v6 = vld [vmem:[%s332_s23] sm:$0xff]  ;;  %v337_v7 = vld [vmem:[%s332_s23 + $0x8] sm:$0xff]  ;;  %v338_v8 = vld [vmem:[%s332_s23 + $0x10] sm:$0xff]  ;;  %s2522_s15 = sshra.s32 %s1987_s30, 4  ;;  %s2523_s15 = int_to_ptr.hbm [resolvable:$true] %s2522_s15 }
  0x1d   : > { %v340_v9 = vpack.c.bf16 %v336_v6, %v336_v6  ;;  %v341_v10 = vpack.c.bf16 %v337_v7, %v337_v7  ;;  %v342_v11 = vpack.c.bf16 %v338_v8, %v338_v8  ;;  %v339_v12 = vld [vmem:[%s332_s23 + $0x18] sm:$0xff]  ;;  %v855_v34 = vld [vmem:[%s3845_s4 + $0x68] sm:$0xff]  ;;  %v854_v35 = vld [vmem:[%s3845_s4 + $0x60] sm:$0xff]  ;;  %s2050_s23 = sshll.u32 %s325_s22, 2  ;;  %s2524_s26 = scalar_lea.hbm %s2523_s15, 4 }
  0x1e   : > { %v343_v13 = vpack.c.bf16 %v339_v12, %v339_v12  ;;  %v852_v36 = vld [vmem:[%s3845_s4 + $0x50] sm:$0xff]  ;;  %v850_v37 = vld [vmem:[%s3845_s4 + $0x40] sm:$0xff]  ;;  %v853_v38 = vld [vmem:[%s3845_s4 + $0x58] sm:$0xff]  ;;  %s327_s28 = scalar_lea.vmem [#allocation3], %s2050_s23  ;;  %p2525_p11 = scmp.ne.s32.totalorder %s2523_s15, %s2524_s26 }
  0x1f   : > { %453 = vperm.xlu0 %2249, %v375_v4   ;;  %443 = vperm.xlu1 %2250, %v373_v5   ;;  %v523_v14 = vsel %vm521_vm0, %v340_v9, 0  ;;  %v526_v15 = vsel %vm521_vm0, %v341_v10, 0  ;;  %v529_v16 = vsel %vm521_vm0, %v342_v11, 0  ;;  %v2188_v39 = vld [vmem:[%s3842_s1 + $0x18] sm:$0xff]  ;;  %v851_v40 = vld [vmem:[%s3845_s4 + $0x48] sm:$0xff]  ;;  %v848_v42 = vld [vmem:[%s3845_s4 + $0x30] sm:$0xff]  ;;  %p2529_p0 = scmp.lt.s32.totalorder %s2523_s15, %s3850_s9 }
  0x20   : > { %541 = vmatpush.bf16.msra.mxu0 %v523_v14  ;;  %590 = vmatpush.bf16.msra.mxu1 %v526_v15  ;;  %v532_v19 = vsel %vm521_vm0, %v343_v13, 0  ;;  %v849_v41 = vld [vmem:[%s3845_s4 + $0x38] sm:$0xff]  ;;  %v846_v43 = vld [vmem:[%s3845_s4 + $0x20] sm:$0xff]  ;;  %v844_v44 = vld [vmem:[%s3845_s4 + $0x10] sm:$0xff]  ;;  %s1984_s29 = sshll.u32 %s327_s28, 4  ;;  %p2526_p12 = pnand %p2525_p11, %p2661_p5  ;;  %s1985_s29 = int_to_ptr.vmem [resolvable:$true] %s1984_s29 }
  0x21   : > { %639 = vmatpush.bf16.msra.mxu2 %v529_v16  ;;  %688 = vmatpush.bf16.msra.mxu3 %v532_v19  ;;  %v847_v45 = vld [vmem:[%s3845_s4 + $0x28] sm:$0xff]  ;;  %v2189_v46 = vld [vmem:[%s3842_s1 + $0x20] sm:$0xff]  ;;  %v845_v47 = vld [vmem:[%s3845_s4 + $0x18] sm:$0xff] }
  0x22   : > { %433 = vperm.xlu2 %2251, %v371_v18   ;;  %v843_v48 = vld [vmem:[%s3845_s4 + $0x8] sm:$0xff]  ;;  %v842_v49 = vld [vmem:[%s3845_s4] sm:$0xff]  ;;  %v1296_v51 = vld [vmem:[%s3847_s6 + $0x10] sm:$0xff]  ;;  %p2527_p13 = pneg %p2526_p12 }
  0x23   : > { %2085 = vmatmul.msk.bf16.vlgmr.msra.gmra.mxu0 %vm496_vm1, %v2185_v17  ;;  %2093 = vmatmul.msk.bf16.vlgmr.msra.gmra.mxu1 %vm496_vm1, %v2185_v17  ;;  %v1294_v50 = vld [vmem:[%s3847_s6] sm:$0xff]  ;;  %v1295_v52 = vld [vmem:[%s3847_s6 + $0x8] sm:$0xff]  ;;  %v1297_v54 = vld [vmem:[%s3847_s6 + $0x18] sm:$0xff] }
  0x24   : > { %2101 = vmatmul.msk.bf16.vlgmr.msra.gmra.mxu2 %vm496_vm1, %v2185_v17  ;;  %2109 = vmatmul.msk.bf16.vlgmr.msra.gmra.mxu3 %vm496_vm1, %v2185_v17  ;;  %v2190_v53 = vld [vmem:[%s3842_s1 + $0x28] sm:$0xff]  ;;  %v1298_v56 = vld [vmem:[%s3847_s6 + $0x20] sm:$0xff]  ;;  %v1300_v57 = vld [vmem:[%s3847_s6 + $0x30] sm:$0xff] }
  0x25   : > { %v1299_v55 = vld [vmem:[%s3847_s6 + $0x28] sm:$0xff]  ;;  %v1302_v58 = vld [vmem:[%s3847_s6 + $0x40] sm:$0xff]  ;;  %v1301_v59 = vld [vmem:[%s3847_s6 + $0x38] sm:$0xff] }
  0x26   : > { %v2191_v60 = vld [vmem:[%s3842_s1 + $0x30] sm:$0xff]  ;;  %v1303_v61 = vld [vmem:[%s3847_s6 + $0x48] sm:$0xff]  ;;  %v1305_v62 = vld [vmem:[%s3847_s6 + $0x58] sm:$0xff] }
  0x27   : > { %423 = vperm.xlu1 %2250, %v369_v20   ;;  %418 = vperm.xlu0 %2249, %v368_v21   ;;  %v1304_v63 = vld [vmem:[%s3847_s6 + $0x50] sm:$0xff]  ;;  %v1306_v0 = vld [vmem:[%s3847_s6 + $0x60] sm:$0xff]  ;;  %v1307_v2 = vld [vmem:[%s3847_s6 + $0x68] sm:$0xff] }
  0x28   : > { %v1308_v1 = vld [vmem:[%s3847_s6 + $0x70] sm:$0xff]  ;;  %v2192_v3 = vld [vmem:[%s3842_s1 + $0x38] sm:$0xff]  ;;  %v1699_v5 = vld [vmem:[%s3848_s7 + $0x8] sm:$0xff] }
  0x29   : > { %v1309_v4 = vld [vmem:[%s3847_s6 + $0x78] sm:$0xff]  ;;  %v1698_v6 = vld [vmem:[%s3848_s7] sm:$0xff]  ;;  %v1700_v7 = vld [vmem:[%s3848_s7 + $0x10] sm:$0xff] }
  0x2a   : > { %408 = vperm.xlu2 %2251, %v366_v22   ;;  %v1702_v8 = vld [vmem:[%s3848_s7 + $0x20] sm:$0xff]  ;;  %v1701_v9 = vld [vmem:[%s3848_s7 + $0x18] sm:$0xff]  ;;  %v1703_v10 = vld [vmem:[%s3848_s7 + $0x28] sm:$0xff] }
  0x2b   : > { %v1705_v13 = vld [vmem:[%s3848_s7 + $0x38] sm:$0xff]  ;;  %v1704_v14 = vld [vmem:[%s3848_s7 + $0x30] sm:$0xff]  ;;  %v1706_v17 = vld [vmem:[%s3848_s7 + $0x40] sm:$0xff] }
  0x2c   : > { %v1708_v20 = vld [vmem:[%s3848_s7 + $0x50] sm:$0xff]  ;;  %v1707_v21 = vld [vmem:[%s3848_s7 + $0x48] sm:$0xff] }
  0x2f   : > { %413 = vperm.xlu0 %2249, %v367_v23   ;;  %398 = vperm.xlu1 %2250, %v364_v24   ;;  %v1709_v24 = vld [vmem:[%s3848_s7 + $0x58] sm:$0xff] }
  0x32   : > { %403 = vperm.xlu2 %2251, %v365_v26  }
  0x33   : > { %2086 = vmatmul.msk.bf16.gmra.mxu0 %vm496_vm1, %v2186_v25  ;;  %2094 = vmatmul.msk.bf16.gmra.mxu1 %vm496_vm1, %v2186_v25 }
  0x34   : > { %2102 = vmatmul.msk.bf16.gmra.mxu2 %vm496_vm1, %v2186_v25  ;;  %2110 = vmatmul.msk.bf16.gmra.mxu3 %vm496_vm1, %v2186_v25 }
  0x37   : > { %393 = vperm.xlu1 %2250, %v363_v27   ;;  %388 = vperm.xlu0 %2249, %v362_v28   ;;  %v1711_v27 = vld [vmem:[%s3848_s7 + $0x68] sm:$0xff]  ;;  %v1710_v28 = vld [vmem:[%s3848_s7 + $0x60] sm:$0xff] }
  0x3a   : > { %378 = vperm.xlu2 %2251, %v360_v29  }
  0x3f   : > { %930 = vperm.xlu1 %2250, %v856_v30   ;;  %383 = vperm.xlu0 %2249, %v361_v31   ;;  %v1712_v31 = vld [vmem:[%s3848_s7 + $0x70] sm:$0xff] }
  0x42   : > { %935 = vperm.xlu2 %2251, %v857_v33  }
  0x43   : > { %2087 = vmatmul.msk.bf16.gmra.mxu0 %vm496_vm1, %v2187_v32  ;;  %2095 = vmatmul.msk.bf16.gmra.mxu1 %vm496_vm1, %v2187_v32 }
  0x44   : > { %2103 = vmatmul.msk.bf16.gmra.mxu2 %vm496_vm1, %v2187_v32  ;;  %2111 = vmatmul.msk.bf16.gmra.mxu3 %vm496_vm1, %v2187_v32 }
  0x47   : > { %925 = vperm.xlu1 %2250, %v855_v34   ;;  %920 = vperm.xlu0 %2249, %v854_v35   ;;  %v1713_v34 = vld [vmem:[%s3848_s7 + $0x78] sm:$0xff] }
  0x4a   : > { %910 = vperm.xlu2 %2251, %v852_v36  }
  0x4f   : > { %900 = vperm.xlu1 %2250, %v850_v37   ;;  %915 = vperm.xlu0 %2249, %v853_v38  }
  0x52   : > { %905 = vperm.xlu2 %2251, %v851_v40  }
  0x53   : > { %2088 = vmatmul.msk.bf16.gmra.mxu0 %vm496_vm1, %v2188_v39  ;;  %2096 = vmatmul.msk.bf16.gmra.mxu1 %vm496_vm1, %v2188_v39 }
  0x54   : > { %2104 = vmatmul.msk.bf16.gmra.mxu2 %vm496_vm1, %v2188_v39  ;;  %2112 = vmatmul.msk.bf16.gmra.mxu3 %vm496_vm1, %v2188_v39 }
  0x57   : > { %895 = vperm.xlu1 %2250, %v849_v41   ;;  %890 = vperm.xlu0 %2249, %v848_v42  }
  0x5a   : > { %880 = vperm.xlu2 %2251, %v846_v43  }
  0x5f   : > { %870 = vperm.xlu1 %2250, %v844_v44   ;;  %885 = vperm.xlu0 %2249, %v847_v45  }
  0x62   : > { %875 = vperm.xlu2 %2251, %v845_v47  }
  0x63   : > { %2089 = vmatmul.msk.bf16.gmra.mxu0 %vm496_vm1, %v2189_v46  ;;  %2097 = vmatmul.msk.bf16.gmra.mxu1 %vm496_vm1, %v2189_v46 }
  0x64   : > { %2105 = vmatmul.msk.bf16.gmra.mxu2 %vm496_vm1, %v2189_v46  ;;  %2113 = vmatmul.msk.bf16.gmra.mxu3 %vm496_vm1, %v2189_v46 }
  0x67   : > { %865 = vperm.xlu1 %2250, %v843_v48   ;;  %860 = vperm.xlu0 %2249, %v842_v49  }
  0x6a   : > { %1312 = vperm.xlu2 %2251, %v1294_v50  }
  0x6f   : > { %1322 = vperm.xlu1 %2250, %v1296_v51   ;;  %1317 = vperm.xlu0 %2249, %v1295_v52  }
  0x72   : > { %1327 = vperm.xlu2 %2251, %v1297_v54  }
  0x73   : > { %2090 = vmatmul.msk.bf16.gmra.mxu0 %vm496_vm1, %v2190_v53  ;;  %2098 = vmatmul.msk.bf16.gmra.mxu1 %vm496_vm1, %v2190_v53 }
  0x74   : > { %2106 = vmatmul.msk.bf16.gmra.mxu2 %vm496_vm1, %v2190_v53  ;;  %2114 = vmatmul.msk.bf16.gmra.mxu3 %vm496_vm1, %v2190_v53 }
  0x77   : > { %1337 = vperm.xlu1 %2250, %v1299_v55   ;;  %1332 = vperm.xlu0 %2249, %v1298_v56  }
  0x7a   : > { %1342 = vperm.xlu2 %2251, %v1300_v57  }
  0x7f   : > { %1352 = vperm.xlu1 %2250, %v1302_v58   ;;  %1347 = vperm.xlu0 %2249, %v1301_v59  }
  0x82   : > { %1357 = vperm.xlu2 %2251, %v1303_v61   ;;  %v3006_v61 = vpop.permute.xlu2 %428 }
  0x83   : > { %2091 = vmatmul.msk.bf16.gmra.mxu0 %vm496_vm1, %v2191_v60  ;;  %2099 = vmatmul.msk.bf16.gmra.mxu1 %vm496_vm1, %v2191_v60 }
  0x84   : > { %2107 = vmatmul.msk.bf16.gmra.mxu2 %vm496_vm1, %v2191_v60  ;;  %2115 = vmatmul.msk.bf16.gmra.mxu3 %vm496_vm1, %v2191_v60 }
  0x87   : > { %1367 = vperm.xlu1 %2250, %v1305_v62   ;;  %1362 = vperm.xlu0 %2249, %v1304_v63  }
  0x89   : > { %v2986_v51 = vpop.permute.xlu0 %448  ;;  %v3008_v62 = vpop.permute.xlu1 %438 }
  0x8a   : > { %1372 = vperm.xlu2 %2251, %v1306_v0  }
  0x8f   : > { %1382 = vperm.xlu1 %2250, %v1308_v1   ;;  %1377 = vperm.xlu0 %2249, %v1307_v2  }
  0x91   : > { %v2996_v56 = vpop.permute.xlu0 %453 }
  0x92   : > { %1387 = vperm.xlu2 %2251, %v1309_v4   ;;  %v3016_v4 = vpop.permute.xlu2 %433 }
  0x93   : > { %2092 = vmatmul.msk.bf16.gmra.mxu0 %vm496_vm1, %v2192_v3  ;;  %2100 = vmatmul.msk.bf16.gmra.mxu1 %vm496_vm1, %v2192_v3 }
  0x94   : > { %2108 = vmatmul.msk.bf16.gmra.mxu2 %vm496_vm1, %v2192_v3  ;;  %2116 = vmatmul.msk.bf16.gmra.mxu3 %vm496_vm1, %v2192_v3 }
  0x97   : > { %1721 = vperm.xlu1 %2250, %v1699_v5   ;;  %1716 = vperm.xlu0 %2249, %v1698_v6   ;;  %v3018_v5 = vpop.permute.xlu1 %443 }
  0x99   : > { %v3014_v3 = vpop.permute.xlu0 %418 }
  0x9a   : > { %1726 = vperm.xlu2 %2251, %v1700_v7  }
  0x9f   : > { %1736 = vperm.xlu1 %2250, %v1702_v8   ;;  %1731 = vperm.xlu0 %2249, %v1701_v9  }
  0xa0   : > { %v2900_v11 = vpop.f32.mrf.mxu0  ;;  %v2902_v12 = vpop.f32.mrf.mxu1 }
  0xa2   : > { %1741 = vperm.xlu2 %2251, %v1703_v10   ;;  %v3024_v10 = vpop.permute.xlu0 %413 }
  0xa7   : > { %v2910_v15 = vpop.f32.mrf.mxu2  ;;  %v2912_v16 = vpop.f32.mrf.mxu3  ;;  %1751 = vperm.xlu1 %2250, %v1705_v13   ;;  %1746 = vperm.xlu0 %2249, %v1704_v14  }
  0xa8   : > { %3873 = vst [vmem:[#allocation6_spill] sm:$0xff] %v2910_v15  ;;  %v2917_v18 = vpop.f32.mrf.mxu0  ;;  %v2919_v19 = vpop.f32.mrf.mxu1 }
  0xa9   : > { %3874 = vst [vmem:[#allocation7_spill] sm:$0xff] %v2912_v16  ;;  %v3026_v13 = vpop.permute.xlu2 %408  ;;  %v3028_v14 = vpop.permute.xlu1 %423 }
  0xaa   : > { %1756 = vperm.xlu2 %2251, %v1706_v17  }
  0xaf   : > { %v2927_v22 = vpop.f32.mrf.mxu2  ;;  %v2929_v23 = vpop.f32.mrf.mxu3  ;;  %1766 = vperm.xlu1 %2250, %v1708_v20   ;;  %1761 = vperm.xlu0 %2249, %v1707_v21  }
  0xb0   : > { %3875 = vst [vmem:[#allocation8_spill] sm:$0xff] %v2927_v22  ;;  %v2934_v25 = vpop.f32.mrf.mxu0  ;;  %v2936_v26 = vpop.f32.mrf.mxu1 }
  0xb1   : > { %3876 = vst [vmem:[#allocation9_spill] sm:$0xff] %v2929_v23  ;;  %v3040_v15 = vpop.permute.xlu2 %403  ;;  %v3042_v23 = vpop.permute.xlu1 %398 }
  0xb2   : > { %1771 = vperm.xlu2 %2251, %v1709_v24   ;;  %3889 = vst [vmem:[#allocation22_spill] sm:$0xff] %v3040_v15 }
  0xb3   : > { %3890 = vst [vmem:[#allocation23_spill] sm:$0xff] %v3042_v23 }
  0xb7   : > { %v2944_v29 = vpop.f32.mrf.mxu2  ;;  %v2946_v30 = vpop.f32.mrf.mxu3  ;;  %1781 = vperm.xlu1 %2250, %v1711_v27   ;;  %1776 = vperm.xlu0 %2249, %v1710_v28  }
  0xb8   : > { %3877 = vst [vmem:[#allocation10_spill] sm:$0xff] %v2944_v29  ;;  %v2951_v32 = vpop.f32.mrf.mxu0  ;;  %v2953_v33 = vpop.f32.mrf.mxu1 }
  0xb9   : > { %3878 = vst [vmem:[#allocation11_spill] sm:$0xff] %v2946_v30  ;;  %v3034_v27 = vpop.permute.xlu0 %388 }
  0xba   : > { %1786 = vperm.xlu2 %2251, %v1712_v31   ;;  %3888 = vst [vmem:[#allocation21_spill] sm:$0xff] %v3034_v27 }
  0xbf   : > { %v2958_v35 = vpop.f32.mrf.mxu2  ;;  %v2960_v36 = vpop.f32.mrf.mxu3  ;;  %1791 = vperm.xlu0 %2249, %v1713_v34  }
  0xc0   : > { %3879 = vst [vmem:[#allocation12_spill] sm:$0xff] %v2958_v35  ;;  %v2962_v37 = vpop.f32.mrf.mxu0  ;;  %v2964_v38 = vpop.f32.mrf.mxu1 }
  0xc1   : > { %3880 = vst [vmem:[#allocation13_spill] sm:$0xff] %v2960_v36  ;;  %v3048_v35 = vpop.permute.xlu0 %383 }
  0xc2   : > { %3891 = vst [vmem:[#allocation24_spill] sm:$0xff] %v3048_v35 }
  0xc7   : > { %v2966_v39 = vpop.f32.mrf.mxu2  ;;  %v2968_v40 = vpop.f32.mrf.mxu3 }
  0xc8   : > { %3881 = vst [vmem:[#allocation14_spill] sm:$0xff] %v2966_v39  ;;  %v2970_v41 = vpop.f32.mrf.mxu0  ;;  %v2972_v42 = vpop.f32.mrf.mxu1 }
  0xc9   : > { %3882 = vst [vmem:[#allocation15_spill] sm:$0xff] %v2968_v40  ;;  %v3050_v40 = vpop.permute.xlu2 %378 }
  0xca   : > { %3892 = vst [vmem:[#allocation25_spill] sm:$0xff] %v3050_v40  ;;  %v3054_v39 = vadd.f32 %v2900_v11, %v3050_v40 }
  0xcc   : > { %3893 = vst [vmem:[#allocation26_spill] sm:$0xff] %v3054_v39 }
  0xcf   : > { %v2974_v43 = vpop.f32.mrf.mxu2  ;;  %v2976_v44 = vpop.f32.mrf.mxu3 }
  0xd0   : > { %3883 = vst [vmem:[#allocation16_spill] sm:$0xff] %v2974_v43  ;;  %v558_v45 = vpop.f32.mrf.mxu0  ;;  %v607_v46 = vpop.f32.mrf.mxu1 }
  0xd1   : > { %3884 = vst [vmem:[#allocation17_spill] sm:$0xff] %v2976_v44  ;;  %v3058_v44 = vadd.f32 %v2902_v12, %v3050_v40  ;;  %v3060_v43 = vpop.permute.xlu1 %393  ;;  %v3080_v12 = vadd.f32 %v2917_v18, %v3048_v35  ;;  %v3100_v18 = vadd.f32 %v2972_v42, %v3040_v15  ;;  %v3103_v40 = vadd.f32 %v558_v45, %v3026_v13 }
  0xd2   : > { %3895 = vst [vmem:[#allocation28_spill] sm:$0xff] %v3060_v43  ;;  %v3076_v11 = vadd.f32 %v2953_v33, %v3060_v43  ;;  %v3096_v33 = vadd.f32 %v2970_v41, %v3040_v15 }
  0xd3   : > { %3894 = vst [vmem:[#allocation27_spill] sm:$0xff] %v3058_v44 }
  0xd4   : > { %3898 = vst [vmem:[#allocation31_spill] sm:$0xff] %v3076_v11 }
  0xd5   : > { %3899 = vst [vmem:[#allocation32_spill] sm:$0xff] %v3080_v12 }
  0xd7   : > { %v2978_v47 = vpop.f32.mrf.mxu2  ;;  %v2980_v48 = vpop.f32.mrf.mxu3 }
  0xd8   : > { %3885 = vst [vmem:[#allocation18_spill] sm:$0xff] %v2978_v47  ;;  %v2982_v49 = vpop.f32.mrf.mxu0  ;;  %v2984_v50 = vpop.f32.mrf.mxu1  ;;  %v3068_v47 = vadd.f32 %v2936_v26, %v3034_v27  ;;  %v3088_v26 = vadd.f32 %v2962_v37, %v3042_v23 }
  0xd9   : > { %3886 = vst [vmem:[#allocation19_spill] sm:$0xff] %v2980_v48  ;;  %v3064_v48 = vadd.f32 %v2934_v25, %v3034_v27  ;;  %v3084_v25 = vadd.f32 %v2919_v19, %v3048_v35  ;;  %v3106_v19 = vadd.f32 %v607_v46, %v3026_v13  ;;  %v3112_v41 = vadd.f32 %v2982_v49, %v3024_v10 }
  0xda   : > { %3896 = vst [vmem:[#allocation29_spill] sm:$0xff] %v3068_v47  ;;  %v3116_v42 = vadd.f32 %v2984_v50, %v3024_v10 }
  0xdb   : > { %3900 = vst [vmem:[#allocation33_spill] sm:$0xff] %v3084_v25 }
  0xdf   : > { %v2988_v52 = vpop.f32.mrf.mxu2  ;;  %v2990_v53 = vpop.f32.mrf.mxu3 }
  0xe0   : > { %3887 = vst [vmem:[#allocation20_spill] sm:$0xff] %v2990_v53  ;;  %v2992_v54 = vpop.f32.mrf.mxu0  ;;  %v2994_v55 = vpop.f32.mrf.mxu1  ;;  %v3072_v53 = vadd.f32 %v2951_v32, %v3060_v43  ;;  %v3092_v32 = vadd.f32 %v2964_v38, %v3042_v23 }
  0xe2   : > { %3897 = vst [vmem:[#allocation30_spill] sm:$0xff] %v3072_v53 }
  0xe7   : > { %v2998_v57 = vpop.f32.mrf.mxu2  ;;  %v3000_v58 = vpop.f32.mrf.mxu3 }
  0xe8   : > { %v3002_v59 = vpop.f32.mrf.mxu0  ;;  %v3004_v60 = vpop.f32.mrf.mxu1 }
  0xef   : > { %v3010_v63 = vpop.f32.mrf.mxu2  ;;  %v3012_v0 = vpop.f32.mrf.mxu3 }
  0xf0   : > { %v568_v1 = vpop.f32.mrf.mxu0  ;;  %v617_v2 = vpop.f32.mrf.mxu1 }
  0xf1   : > { %v569_v49 = vadd.f32 %v568_v1, %v3006_v61  ;;  %v618_v39 = vadd.f32 %v617_v2, %v3006_v61 }
  0xf7   : > { %v3020_v6 = vpop.f32.mrf.mxu2  ;;  %v3022_v7 = vpop.f32.mrf.mxu3 }
  0xf8   : > { %v570_v8 = vpop.f32.mrf.mxu0  ;;  %v619_v9 = vpop.f32.mrf.mxu1 }
  0xf9   : > { %v571_v50 = vadd.f32 %v570_v8, %v3016_v4 }
  0xff   : > { %v3030_v17 = vpop.f32.mrf.mxu2  ;;  %v3032_v20 = vpop.f32.mrf.mxu3 }
 0x100   : > { %v573_v21 = vpop.f32.mrf.mxu0  ;;  %v622_v24 = vpop.f32.mrf.mxu1 }
 0x101   : > { %v574_v45 = vadd.f32 %v573_v21, %v3008_v62  ;;  %v623_v25 = vadd.f32 %v622_v24, %v3008_v62  ;;  %v620_v21 = vadd.f32 %v619_v9, %v3016_v4  ;;  %v566_v9 = vadd.f32 %v3002_v59, %v3028_v14 }
 0x103   : > { %v779_v1 = vmax.f32 %v623_v25, 0.0  ;;  %v775_v47 = vmax.f32 %v620_v21, 0.0 }
 0x107   : > { %v3036_v28 = vpop.f32.mrf.mxu2  ;;  %v3038_v31 = vpop.f32.mrf.mxu3 }
 0x108   : > { %v575_v34 = vpop.f32.mrf.mxu0  ;;  %v624_v16 = vpop.f32.mrf.mxu1 }
 0x10f   : > { %v3044_v22 = vpop.f32.mrf.mxu2  ;;  %v3046_v30 = vpop.f32.mrf.mxu3 }
 0x110   : > { %v578_v29 = vpop.f32.mrf.mxu0  ;;  %v627_v36 = vpop.f32.mrf.mxu1 }
 0x111   : > { %v579_v37 = vadd.f32 %v578_v29, %v2986_v51  ;;  %v628_v35 = vadd.f32 %v627_v36, %v2986_v51  ;;  %v576_v29 = vadd.f32 %v575_v34, %v3018_v5  ;;  %v625_v36 = vadd.f32 %v624_v16, %v3018_v5 }
 0x112   : > { %v3130_v34 = vadd.f32 %v2992_v54, %v3014_v3  ;;  %v3134_v16 = vadd.f32 %v2994_v55, %v3014_v3  ;;  %v770_v54 = vmax.f32 %v569_v49, 0.0  ;;  %v774_v55 = vmax.f32 %v571_v50, 0.0 }
 0x113   : > { %v786_v23 = vmax.f32 %v579_v37, 0.0  ;;  %v787_v24 = vmax.f32 %v628_v35, 0.0  ;;  %v783_v2 = vmax.f32 %v625_v36, 0.0  ;;  %v615_v35 = vadd.f32 %v3004_v60, %v3028_v14 }
 0x114   : > { %v771_v37 = vmax.f32 %v618_v39, 0.0  ;;  %v721_v39 = vadd.f32 %v3038_v31, %v3008_v62  ;;  %v766_v50 = vmax.f32 %v566_v9, 0.0  ;;  %v759_v9 = vmax.f32 %v3116_v42, 0.0  ;;  %v3901_v42 = vld [vmem:[#allocation20_spill] sm:$0xff] }
 0x115   : > { %v767_v21 = vmax.f32 %v615_v35, 0.0 }
 0x117   : > { %v676_v38 = vpop.f32.mrf.mxu2  ;;  %v725_v27 = vpop.f32.mrf.mxu3 }
 0x118   : > { %v580_v46 = vpop.f32.mrf.mxu0  ;;  %v629_v12 = vpop.f32.mrf.mxu1 }
 0x119   : > { %v581_v43 = vadd.f32 %v580_v46, %v2996_v56  ;;  %v630_v44 = vadd.f32 %v629_v12, %v2996_v56  ;;  %v778_v12 = vmax.f32 %v574_v45, 0.0  ;;  %v782_v46 = vmax.f32 %v576_v29, 0.0 }
 0x11b   : > { %v790_v11 = vmax.f32 %v581_v43, 0.0  ;;  %v791_v53 = vmax.f32 %v630_v44, 0.0  ;;  %v677_v43 = vadd.f32 %v676_v38, %v2986_v51  ;;  %v726_v44 = vadd.f32 %v725_v27, %v2986_v51 }
 0x11c   : > { %v672_v51 = vadd.f32 %v3036_v28, %v3008_v62  ;;  %v818_v27 = vpack.c.bf16 %v782_v46, %v778_v12  ;;  %v815_v12 = vpack.c.bf16 %v775_v47, %v771_v37  ;;  %v664_v46 = vadd.f32 %v3010_v63, %v3028_v14 }
 0x11d   : > { %v822_v15 = vpack.c.bf16 %v790_v11, %v786_v23  ;;  %v823_v8 = vpack.c.bf16 %v791_v53, %v787_v24  ;;  %v674_v23 = vadd.f32 %v3044_v22, %v3018_v5  ;;  %v723_v53 = vadd.f32 %v3046_v30, %v3018_v5 }
 0x11e   : > { %v819_v11 = vpack.c.bf16 %v783_v2, %v779_v1  ;;  %v789_v38 = vmax.f32 %v726_v44, 0.0  ;;  %v762_v22 = vmax.f32 %v3130_v34, 0.0  ;;  %v763_v30 = vmax.f32 %v3134_v16, 0.0 }
 0x11f   : > { %v678_v45 = vpop.f32.mrf.mxu2  ;;  %v727_v25 = vpop.f32.mrf.mxu3  ;;  %986 = vmatpush.bf16.msrb.mxu0 %v822_v15  ;;  %1035 = vmatpush.bf16.msrb.mxu1 %v823_v8  ;;  %v788_v15 = vmax.f32 %v677_v43, 0.0  ;;  %v669_v5 = vadd.f32 %v3030_v17, %v3016_v4  ;;  %v784_v28 = vmax.f32 %v674_v23, 0.0  ;;  %v785_v62 = vmax.f32 %v723_v53, 0.0 }
 0x120   : > { %v679_v59 = vadd.f32 %v678_v45, %v2996_v56  ;;  %v728_v60 = vadd.f32 %v727_v25, %v2996_v56  ;;  %v718_v56 = vadd.f32 %v3032_v20, %v3016_v4  ;;  %v814_v24 = vpack.c.bf16 %v774_v55, %v770_v54 }
 0x121   : > { %v667_v34 = vadd.f32 %v3020_v6, %v3006_v61  ;;  %v716_v16 = vadd.f32 %v3022_v7, %v3006_v61  ;;  %v780_v17 = vmax.f32 %v672_v51, 0.0  ;;  %v781_v1 = vmax.f32 %v721_v39, 0.0  ;;  %v3904_v51 = vld [vmem:[#allocation29_spill] sm:$0xff] }
 0x122   : > { %v792_v29 = vmax.f32 %v679_v59, 0.0  ;;  %v793_v36 = vmax.f32 %v728_v60, 0.0  ;;  %v754_v4 = vmax.f32 %v3103_v40, 0.0  ;;  %v755_v20 = vmax.f32 %v3106_v19, 0.0 }
 0x123   : > { %987 = vmatpush.bf16.msrb.mxu0 %v818_v27  ;;  %1036 = vmatpush.bf16.msrb.mxu1 %v819_v11  ;;  %v713_v47 = vadd.f32 %v3012_v0, %v3028_v14  ;;  %v776_v6 = vmax.f32 %v669_v5, 0.0  ;;  %v777_v2 = vmax.f32 %v718_v56, 0.0  ;;  %v820_v8 = vpack.c.bf16 %v784_v28, %v780_v17  ;;  %v3905_v27 = vld [vmem:[#allocation22_spill] sm:$0xff]  ;;  %v3909_v5 = vld [vmem:[#allocation31_spill] sm:$0xff] }
 0x124   : > { %v824_v31 = vpack.c.bf16 %v792_v29, %v788_v15  ;;  %v825_v49 = vpack.c.bf16 %v793_v36, %v789_v38  ;;  %v821_v61 = vpack.c.bf16 %v785_v62, %v781_v1  ;;  %v758_v7 = vmax.f32 %v3112_v41, 0.0  ;;  %v3910_v62 = vld [vmem:[#allocation23_spill] sm:$0xff] }
 0x125   : > { %v810_v35 = vpack.c.bf16 %v766_v50, %v762_v22  ;;  %v811_v40 = vpack.c.bf16 %v767_v21, %v763_v30  ;;  %v662_v19 = vadd.f32 %v2998_v57, %v3014_v3  ;;  %v711_v63 = vadd.f32 %v3000_v58, %v3014_v3  ;;  %v3908_v22 = vld [vmem:[#allocation30_spill] sm:$0xff]  ;;  %v3912_v50 = vld [vmem:[#allocation15_spill] sm:$0xff] }
 0x126   : > { %1084 = vmatpush.bf16.msrb.mxu2 %v824_v31  ;;  %1133 = vmatpush.bf16.msrb.mxu3 %v825_v49  ;;  %v772_v43 = vmax.f32 %v667_v34, 0.0  ;;  %v773_v0 = vmax.f32 %v716_v16, 0.0  ;;  %v746_v14 = vmax.f32 %v3088_v26, 0.0  ;;  %v747_v44 = vmax.f32 %v3092_v32, 0.0  ;;  %v3902_v32 = vld [vmem:[#allocation18_spill] sm:$0xff]  ;;  %v3914_v17 = vld [vmem:[#allocation27_spill] sm:$0xff] }
 0x127   : > { %988 = vmatpush.bf16.msrb.mxu0 %v814_v24  ;;  %1037 = vmatpush.bf16.msrb.mxu1 %v815_v12  ;;  %v659_v41 = vadd.f32 %v2988_v52, %v3024_v10  ;;  %v708_v54 = vadd.f32 %v3901_v42, %v3024_v10  ;;  %v768_v57 = vmax.f32 %v664_v46, 0.0  ;;  %v769_v37 = vmax.f32 %v713_v47, 0.0  ;;  %v3903_v52 = vld [vmem:[#allocation19_spill] sm:$0xff]  ;;  %v3911_v31 = vld [vmem:[#allocation14_spill] sm:$0xff]  ;;  %v3917_v47 = vld [vmem:[#allocation13_spill] sm:$0xff] }
 0x128   : > { %v816_v55 = vpack.c.bf16 %v776_v6, %v772_v43  ;;  %v817_v58 = vpack.c.bf16 %v777_v2, %v773_v0  ;;  %v750_v3 = vmax.f32 %v3096_v33, 0.0  ;;  %v751_v45 = vmax.f32 %v3100_v18, 0.0  ;;  %v3906_v33 = vld [vmem:[#allocation16_spill] sm:$0xff]  ;;  %v3907_v18 = vld [vmem:[#allocation17_spill] sm:$0xff]  ;;  %v3913_v34 = vld [vmem:[#allocation26_spill] sm:$0xff] }
 0x129   : > { %v806_v25 = vpack.c.bf16 %v758_v7, %v754_v4  ;;  %v807_v26 = vpack.c.bf16 %v759_v9, %v755_v20  ;;  %v657_v23 = vadd.f32 %v3902_v32, %v3026_v13  ;;  %v706_v53 = vadd.f32 %v3903_v52, %v3026_v13  ;;  %v3915_v4 = vld [vmem:[#allocation28_spill] sm:$0xff]  ;;  %v3920_v0 = vld [vmem:[#allocation21_spill] sm:$0xff] }
 0x12a   : > { %1085 = vmatpush.bf16.msrb.mxu2 %v820_v8  ;;  %1134 = vmatpush.bf16.msrb.mxu3 %v821_v61  ;;  %v764_v59 = vmax.f32 %v662_v19, 0.0  ;;  %v765_v10 = vmax.f32 %v711_v63, 0.0  ;;  %v738_v60 = vmax.f32 %v3064_v48, 0.0  ;;  %v739_v39 = vmax.f32 %v3904_v51, 0.0  ;;  %v3916_v20 = vld [vmem:[#allocation12_spill] sm:$0xff]  ;;  %v3919_v63 = vld [vmem:[#allocation33_spill] sm:$0xff] }
 0x12b   : > { %989 = vmatpush.bf16.msrb.mxu0 %v810_v35  ;;  %1038 = vmatpush.bf16.msrb.mxu1 %v811_v40  ;;  %v654_v11 = vadd.f32 %v3906_v33, %v3905_v27  ;;  %v703_v15 = vadd.f32 %v3907_v18, %v3905_v27  ;;  %v760_v38 = vmax.f32 %v659_v41, 0.0  ;;  %v761_v29 = vmax.f32 %v708_v54, 0.0  ;;  %v3918_v40 = vld [vmem:[#allocation32_spill] sm:$0xff]  ;;  %v3922_v41 = vld [vmem:[#allocation11_spill] sm:$0xff] }
 0x12c   : > { %v812_v36 = vpack.c.bf16 %v768_v57, %v764_v59  ;;  %v813_v13 = vpack.c.bf16 %v769_v37, %v765_v10  ;;  %v742_v30 = vmax.f32 %v3908_v22, 0.0  ;;  %v743_v56 = vmax.f32 %v3909_v5, 0.0  ;;  %v3923_v37 = vld [vmem:[#allocation24_spill] sm:$0xff]  ;;  %v3926_v59 = vld [vmem:[#allocation25_spill] sm:$0xff]  ;;  %v3927_v10 = vld [vmem:[#allocation6_spill] sm:$0xff] }
 0x12d   : > { %v802_v28 = vpack.c.bf16 %v750_v3, %v746_v14  ;;  %v803_v48 = vpack.c.bf16 %v751_v45, %v747_v44  ;;  %v652_v49 = vadd.f32 %v3911_v31, %v3910_v62  ;;  %v701_v21 = vadd.f32 %v3912_v50, %v3910_v62  ;;  %v3921_v14 = vld [vmem:[#allocation10_spill] sm:$0xff]  ;;  %v3925_v3 = vld [vmem:[#allocation9_spill] sm:$0xff]  ;;  %v3928_v51 = vld [vmem:[#allocation7_spill] sm:$0xff] }
 0x12e   : > { %1086 = vmatpush.bf16.msrb.mxu2 %v816_v55  ;;  %1135 = vmatpush.bf16.msrb.mxu3 %v817_v58  ;;  %v756_v24 = vmax.f32 %v657_v23, 0.0  ;;  %v757_v12 = vmax.f32 %v706_v53, 0.0  ;;  %v730_v16 = vmax.f32 %v3913_v34, 0.0  ;;  %v731_v1 = vmax.f32 %v3914_v17, 0.0  ;;  %v3924_v55 = vld [vmem:[#allocation8_spill] sm:$0xff]  ;;  %v2194_v5 = vld [vmem:[%s3844_s3 + $0x8] sm:$0xff] }
 0x12f   : > { %990 = vmatpush.bf16.msrb.mxu0 %v806_v25  ;;  %1039 = vmatpush.bf16.msrb.mxu1 %v807_v26  ;;  %v649_v46 = vadd.f32 %v3916_v20, %v3915_v4  ;;  %v698_v6 = vadd.f32 %v3917_v47, %v3915_v4  ;;  %v752_v2 = vmax.f32 %v654_v11, 0.0  ;;  %v753_v8 = vmax.f32 %v703_v15, 0.0  ;;  %v2193_v11 = vld [vmem:[%s3844_s3] sm:$0xff]  ;;  %v2198_v62 = vld [vmem:[%s3844_s3 + $0x28] sm:$0xff]  ;;  %v2199_v31 = vld [vmem:[%s3844_s3 + $0x30] sm:$0xff] }
 0x130   : > { %v808_v61 = vpack.c.bf16 %v760_v38, %v756_v24  ;;  %v809_v7 = vpack.c.bf16 %v761_v29, %v757_v12  ;;  %v798_v9 = vpack.c.bf16 %v742_v30, %v738_v60  ;;  %v799_v35 = vpack.c.bf16 %v743_v56, %v739_v39  ;;  %v2195_v56 = vld [vmem:[%s3844_s3 + $0x10] sm:$0xff] }
 0x131   : > { %v734_v19 = vmax.f32 %v3918_v40, 0.0  ;;  %v735_v43 = vmax.f32 %v3919_v63, 0.0  ;;  %v647_v44 = vadd.f32 %v3921_v14, %v3920_v0  ;;  %v696_v42 = vadd.f32 %v3922_v41, %v3920_v0 }
 0x132   : > { %1087 = vmatpush.bf16.msrb.mxu2 %v812_v36  ;;  %1136 = vmatpush.bf16.msrb.mxu3 %v813_v13  ;;  %v748_v54 = vmax.f32 %v652_v49, 0.0  ;;  %v749_v57 = vmax.f32 %v701_v21, 0.0  ;;  %v644_v58 = vadd.f32 %v3924_v55, %v3923_v37  ;;  %v693_v45 = vadd.f32 %v3925_v3, %v3923_v37  ;;  %v2200_v49 = vld [vmem:[%s3844_s3 + $0x38] sm:$0xff]  ;;  %v3306_v3 = vpop.permute.xlu2 %935 }
 0x133   : > { %991 = vmatpush.bf16.msrb.mxu0 %v802_v28  ;;  %1040 = vmatpush.bf16.msrb.mxu1 %v803_v48  ;;  %v744_v25 = vmax.f32 %v649_v46, 0.0  ;;  %v745_v26 = vmax.f32 %v698_v6, 0.0  ;;  %v794_v52 = vpack.c.bf16 %v734_v19, %v730_v16  ;;  %v795_v53 = vpack.c.bf16 %v735_v43, %v731_v1  ;;  %v2196_v28 = vld [vmem:[%s3844_s3 + $0x18] sm:$0xff]  ;;  %v2197_v48 = vld [vmem:[%s3844_s3 + $0x20] sm:$0xff]  ;;  %v3284_v43 = vpop.permute.xlu1 %930 }
 0x134   : > { %v804_v32 = vpack.c.bf16 %v752_v2, %v748_v54  ;;  %v805_v23 = vpack.c.bf16 %v753_v8, %v749_v57  ;;  %v642_v60 = vadd.f32 %v3927_v10, %v3926_v59  ;;  %v691_v39 = vadd.f32 %v3928_v51, %v3926_v59 }
 0x135   : > { %v740_v27 = vmax.f32 %v647_v44, 0.0  ;;  %v741_v33 = vmax.f32 %v696_v42, 0.0  ;;  %v736_v38 = vmax.f32 %v644_v58, 0.0  ;;  %v737_v29 = vmax.f32 %v693_v45, 0.0  ;;  %v3294_v42 = vpop.permute.xlu0 %920 }
 0x136   : > { %1088 = vmatpush.bf16.msrb.mxu2 %v808_v61  ;;  %1137 = vmatpush.bf16.msrb.mxu3 %v809_v7  ;;  %v732_v36 = vmax.f32 %v642_v60, 0.0  ;;  %v733_v13 = vmax.f32 %v691_v39, 0.0 }
 0x137   : > { %992 = vmatpush.bf16.msrb.mxu0 %v798_v9  ;;  %1041 = vmatpush.bf16.msrb.mxu1 %v799_v35  ;;  %v800_v18 = vpack.c.bf16 %v744_v25, %v740_v27  ;;  %v801_v15 = vpack.c.bf16 %v745_v26, %v741_v33 }
 0x138   : > { %v796_v22 = vpack.c.bf16 %v736_v38, %v732_v36  ;;  %v797_v30 = vpack.c.bf16 %v737_v29, %v733_v13 }
 0x13a   : > { %1089 = vmatpush.bf16.msrb.mxu2 %v804_v32  ;;  %1138 = vmatpush.bf16.msrb.mxu3 %v805_v23 }
 0x13b   : > { %993 = vmatpush.bf16.msrb.mxu0 %v794_v52  ;;  %1042 = vmatpush.bf16.msrb.mxu1 %v795_v53  ;;  %v3300_v37 = vpop.permute.xlu1 %925  ;;  %v3320_v53 = vpop.permute.xlu2 %910 }
 0x13d   : > { %v3312_v26 = vpop.permute.xlu0 %915 }
 0x13e   : > { %1090 = vmatpush.bf16.msrb.mxu2 %v800_v18  ;;  %1139 = vmatpush.bf16.msrb.mxu3 %v801_v15 }
 0x13f   : > { %994 = vmatmul.bf16.vlgmr.msrb.gmra.mxu0 %v2193_v11  ;;  %1043 = vmatmul.bf16.vlgmr.msrb.gmra.mxu1 %v2193_v11 }
 0x142   : > { %1091 = vmatpush.bf16.msrb.mxu2 %v796_v22  ;;  %1140 = vmatpush.bf16.msrb.mxu3 %v797_v30 }
 0x143   : > { %v3314_v32 = vpop.permute.xlu1 %900  ;;  %v3338_v18 = vpop.permute.xlu2 %905 }
 0x145   : > { %1092 = vmatmul.bf16.vlgmr.msrb.gmra.mxu2 %v2193_v11  ;;  %1141 = vmatmul.bf16.vlgmr.msrb.gmra.mxu3 %v2193_v11  ;;  %v3326_v60 = vpop.permute.xlu0 %890 }
 0x14b   : > { %v3332_v27 = vpop.permute.xlu1 %895  ;;  %v3352_v30 = vpop.permute.xlu2 %880 }
 0x14d   : > { %v3344_v29 = vpop.permute.xlu0 %885 }
 0x14f   : > { %999 = vmatmul.bf16.gmra.mxu0 %v2194_v5  ;;  %1048 = vmatmul.bf16.gmra.mxu1 %v2194_v5 }
 0x153   : > { %v3346_v36 = vpop.permute.xlu1 %870 }
 0x154   : > { %3938 = vst [vmem:[#allocation23_spill] sm:$0xff] %v3346_v36 }
 0x155   : > { %1097 = vmatmul.bf16.gmra.mxu2 %v2194_v5  ;;  %1146 = vmatmul.bf16.gmra.mxu3 %v2194_v5 }
 0x15f   : > { %1004 = vmatmul.bf16.gmra.mxu0 %v2195_v56  ;;  %1053 = vmatmul.bf16.gmra.mxu1 %v2195_v56 }
 0x165   : > { %1102 = vmatmul.bf16.gmra.mxu2 %v2195_v56  ;;  %1151 = vmatmul.bf16.gmra.mxu3 %v2195_v56 }
 0x16f   : > { %1009 = vmatmul.bf16.gmra.mxu0 %v2196_v28  ;;  %1058 = vmatmul.bf16.gmra.mxu1 %v2196_v28 }
 0x175   : > { %1107 = vmatmul.bf16.gmra.mxu2 %v2196_v28  ;;  %1156 = vmatmul.bf16.gmra.mxu3 %v2196_v28  ;;  %v3358_v28 = vpop.permute.xlu0 %860 }
 0x176   : > { %3939 = vst [vmem:[#allocation14_spill] sm:$0xff] %v3358_v28 }
 0x17f   : > { %1014 = vmatmul.bf16.gmra.mxu0 %v2197_v48  ;;  %1063 = vmatmul.bf16.gmra.mxu1 %v2197_v48 }
 0x185   : > { %1112 = vmatmul.bf16.gmra.mxu2 %v2197_v48  ;;  %1161 = vmatmul.bf16.gmra.mxu3 %v2197_v48 }
 0x18f   : > { %1019 = vmatmul.bf16.gmra.mxu0 %v2198_v62  ;;  %1068 = vmatmul.bf16.gmra.mxu1 %v2198_v62 }
 0x195   : > { %1117 = vmatmul.bf16.gmra.mxu2 %v2198_v62  ;;  %1166 = vmatmul.bf16.gmra.mxu3 %v2198_v62 }
 0x19f   : > { %1024 = vmatmul.bf16.gmra.mxu0 %v2199_v31  ;;  %1073 = vmatmul.bf16.gmra.mxu1 %v2199_v31 }
 0x1a5   : > { %1122 = vmatmul.bf16.gmra.mxu2 %v2199_v31  ;;  %1171 = vmatmul.bf16.gmra.mxu3 %v2199_v31 }
 0x1af   : > { %1029 = vmatmul.bf16.gmra.mxu0 %v2200_v49  ;;  %1078 = vmatmul.bf16.gmra.mxu1 %v2200_v49 }
 0x1b5   : > { %1127 = vmatmul.bf16.gmra.mxu2 %v2200_v49  ;;  %1176 = vmatmul.bf16.gmra.mxu3 %v2200_v49  ;;  %v3365_v49 = vpop.permute.xlu1 %865 }
 0x1b6   : > { %3940 = vst [vmem:[#allocation15_spill] sm:$0xff] %v3365_v49 }
 0x1bc   : > { %v995_v50 = vpop.f32.mrf.mxu0  ;;  %v3242_v21 = vpop.f32.mrf.mxu1 }
 0x1bd   : > { %v996_v31 = vadd.f32 %v995_v50, %v3358_v28  ;;  %v3379_v50 = vpop.permute.xlu2 %875 }
 0x1be   : > { %3941 = vst [vmem:[#allocation26_spill] sm:$0xff] %v3379_v50 }
 0x1bf   : > { %2252 = vtanh.f32 %v996_v31 }
 0x1c4   : > { %v3244_v24 = vpop.f32.mrf.mxu0  ;;  %v3246_v12 = vpop.f32.mrf.mxu1 }
 0x1c5   : > { %v3391_v31 = vpop.eup %2252 }
 0x1c6   : > { %3942 = vst [vmem:[#allocation27_spill] sm:$0xff] %v3391_v31 }
 0x1c8   : > { %v3248_v34 = vpop.f32.mrf.mxu2  ;;  %v3250_v16 = vpop.f32.mrf.mxu3 }
 0x1c9   : > { %3929 = vst [vmem:[#allocation20_spill] sm:$0xff] %v3248_v34  ;;  %v998_v34 = vadd.f32 %v3244_v24, %v3365_v49 }
 0x1ca   : > { %3930 = vst [vmem:[#allocation18_spill] sm:$0xff] %v3250_v16  ;;  %v1045_v16 = vadd.f32 %v3242_v21, %v3358_v28 }
 0x1cc   : > { %v3252_v17 = vpop.f32.mrf.mxu0  ;;  %v3254_v1 = vpop.f32.mrf.mxu1  ;;  %2254 = vtanh.f32 %v1045_v16 }
 0x1cd   : > { %v1050_v21 = vadd.f32 %v3254_v1, %v3346_v36  ;;  %2256 = vtanh.f32 %v998_v34 }
 0x1d0   : > { %v3256_v4 = vpop.f32.mrf.mxu2  ;;  %v3258_v20 = vpop.f32.mrf.mxu3 }
 0x1d1   : > { %3931 = vst [vmem:[#allocation19_spill] sm:$0xff] %v3256_v4 }
 0x1d2   : > { %3932 = vst [vmem:[#allocation29_spill] sm:$0xff] %v3258_v20  ;;  %v1047_v20 = vadd.f32 %v3246_v12, %v3365_v49  ;;  %v3395_v1 = vpop.eup %2254 }
 0x1d3   : > { %3943 = vst [vmem:[#allocation28_spill] sm:$0xff] %v3395_v1 }
 0x1d4   : > { %v3260_v46 = vpop.f32.mrf.mxu0  ;;  %v3262_v47 = vpop.f32.mrf.mxu1  ;;  %2258 = vtanh.f32 %v1047_v20 }
 0x1d5   : > { %v1003_v24 = vadd.f32 %v3260_v46, %v3379_v50  ;;  %v1052_v12 = vadd.f32 %v3262_v47, %v3379_v50 }
 0x1d8   : > { %v3264_v6 = vpop.f32.mrf.mxu2  ;;  %v3266_v2 = vpop.f32.mrf.mxu3 }
 0x1d9   : > { %3933 = vst [vmem:[#allocation22_spill] sm:$0xff] %v3264_v6  ;;  %v1001_v6 = vadd.f32 %v3252_v17, %v3346_v36 }
 0x1da   : > { %3934 = vst [vmem:[#allocation16_spill] sm:$0xff] %v3266_v2 }
 0x1db   : > { %2260 = vtanh.f32 %v1001_v6  ;;  %v3403_v6 = vpop.eup %2256 }
 0x1dc   : > { %v3268_v8 = vpop.f32.mrf.mxu0  ;;  %v3270_v61 = vpop.f32.mrf.mxu1  ;;  %2262 = vtanh.f32 %v1050_v21  ;;  %3944 = vst [vmem:[#allocation12_spill] sm:$0xff] %v3403_v6 }
 0x1dd   : > { %v1006_v17 = vadd.f32 %v3268_v8, %v3352_v30  ;;  %v1055_v16 = vadd.f32 %v3270_v61, %v3352_v30  ;;  %2264 = vtanh.f32 %v1003_v24  ;;  %v3407_v61 = vpop.eup %2258 }
 0x1de   : > { %2266 = vtanh.f32 %v1052_v12  ;;  %3945 = vst [vmem:[#allocation13_spill] sm:$0xff] %v3407_v61 }
 0x1df   : > { %2268 = vtanh.f32 %v1006_v17 }
 0x1e0   : > { %v3272_v7 = vpop.f32.mrf.mxu2  ;;  %v3274_v9 = vpop.f32.mrf.mxu3  ;;  %2270 = vtanh.f32 %v1055_v16 }
 0x1e1   : > { %3935 = vst [vmem:[#allocation17_spill] sm:$0xff] %v3272_v7  ;;  %v3411_v21 = vpop.eup %2260 }
 0x1e2   : > { %3936 = vst [vmem:[#allocation30_spill] sm:$0xff] %v3274_v9  ;;  %v3415_v24 = vpop.eup %2262 }
 0x1e3   : > { %3946 = vst [vmem:[#allocation32_spill] sm:$0xff] %v3411_v21  ;;  %v3419_v1 = vpop.eup %2264 }
 0x1e4   : > { %v3276_v35 = vpop.f32.mrf.mxu0  ;;  %v3278_v40 = vpop.f32.mrf.mxu1  ;;  %3947 = vst [vmem:[#allocation33_spill] sm:$0xff] %v3415_v24 }
 0x1e5   : > { %v1008_v34 = vadd.f32 %v3276_v35, %v3344_v29  ;;  %v1057_v20 = vadd.f32 %v3278_v40, %v3344_v29  ;;  %3948 = vst [vmem:[#allocation21_spill] sm:$0xff] %v3419_v1  ;;  %v3423_v16 = vpop.eup %2266 }
 0x1e6   : > { %3949 = vst [vmem:[#allocation10_spill] sm:$0xff] %v3423_v16 }
 0x1e7   : > { %2272 = vtanh.f32 %v1008_v34  ;;  %v3427_v34 = vpop.eup %2268 }
 0x1e8   : > { %v3280_v19 = vpop.f32.mrf.mxu2  ;;  %v3282_v63 = vpop.f32.mrf.mxu3  ;;  %2274 = vtanh.f32 %v1057_v20 }
 0x1e9   : > { %3937 = vst [vmem:[#allocation31_spill] sm:$0xff] %v3282_v63  ;;  %v3431_v20 = vpop.eup %2270 }
 0x1ec   : > { %v3286_v0 = vpop.f32.mrf.mxu0  ;;  %v3288_v14 = vpop.f32.mrf.mxu1 }
 0x1ed   : > { %v1011_v8 = vadd.f32 %v3286_v0, %v3326_v60  ;;  %v1060_v35 = vadd.f32 %v3288_v14, %v3326_v60  ;;  %v3437_v6 = vpop.eup %2272 }
 0x1ef   : > { %2276 = vtanh.f32 %v1011_v8 }
 0x1f0   : > { %v3290_v44 = vpop.f32.mrf.mxu2  ;;  %v3292_v41 = vpop.f32.mrf.mxu3  ;;  %2278 = vtanh.f32 %v1060_v35 }
 0x1f1   : > { %v3440_v35 = vpop.eup %2274 }
 0x1f4   : > { %v3296_v54 = vpop.f32.mrf.mxu0  ;;  %v3298_v57 = vpop.f32.mrf.mxu1 }
 0x1f5   : > { %v1013_v40 = vadd.f32 %v3296_v54, %v3332_v27  ;;  %v1062_v12 = vadd.f32 %v3298_v57, %v3332_v27 }
 0x1f7   : > { %2280 = vtanh.f32 %v1013_v40 }
 0x1f8   : > { %v3302_v55 = vpop.f32.mrf.mxu2  ;;  %v3304_v58 = vpop.f32.mrf.mxu3  ;;  %2282 = vtanh.f32 %v1062_v12 }
 0x1fc   : > { %v3308_v45 = vpop.f32.mrf.mxu0  ;;  %v3310_v25 = vpop.f32.mrf.mxu1 }
 0x1fd   : > { %v1016_v14 = vadd.f32 %v3308_v45, %v3314_v32  ;;  %v1065_v54 = vadd.f32 %v3310_v25, %v3314_v32 }
 0x1ff   : > { %2284 = vtanh.f32 %v1016_v14 }
 0x200   : > { %v3316_v23 = vpop.f32.mrf.mxu2  ;;  %v3318_v52 = vpop.f32.mrf.mxu3  ;;  %2286 = vtanh.f32 %v1065_v54 }
 0x204   : > { %v3322_v59 = vpop.f32.mrf.mxu0  ;;  %v3324_v10 = vpop.f32.mrf.mxu1 }
 0x205   : > { %v1018_v57 = vadd.f32 %v3322_v59, %v3338_v18  ;;  %v1067_v8 = vadd.f32 %v3324_v10, %v3338_v18  ;;  %v3443_v59 = vpop.eup %2276 }
 0x206   : > { %v3445_v12 = vpop.eup %2278 }
 0x207   : > { %2288 = vtanh.f32 %v1018_v57  ;;  %v3447_v16 = vpop.eup %2280 }
 0x208   : > { %v3328_v51 = vpop.f32.mrf.mxu2  ;;  %v3330_v39 = vpop.f32.mrf.mxu3  ;;  %2290 = vtanh.f32 %v1067_v8 }
 0x209   : > { %v3452_v54 = vpop.eup %2282 }
 0x20a   : > { %v3455_v57 = vpop.eup %2284 }
 0x20b   : > { %v3459_v36 = vpop.eup %2286 }
 0x20c   : > { %v3334_v33 = vpop.f32.mrf.mxu0  ;;  %v3336_v11 = vpop.f32.mrf.mxu1 }
 0x20d   : > { %v1021_v1 = vadd.f32 %v3334_v33, %v3320_v53 }
 0x210   : > { %v3340_v15 = vpop.f32.mrf.mxu2  ;;  %v3342_v38 = vpop.f32.mrf.mxu3 }
 0x214   : > { %v3348_v13 = vpop.f32.mrf.mxu0  ;;  %v3350_v22 = vpop.f32.mrf.mxu1 }
 0x218   : > { %v3354_v5 = vpop.f32.mrf.mxu2  ;;  %v3356_v56 = vpop.f32.mrf.mxu3 }
 0x21c   : > { %v3360_v48 = vpop.f32.mrf.mxu0  ;;  %v3362_v62 = vpop.f32.mrf.mxu1 }
 0x21d   : > { %v1026_v8 = vadd.f32 %v3360_v48, %v3294_v42  ;;  %v1072_v48 = vadd.f32 %v3350_v22, %v3312_v26 }
 0x220   : > { %v3373_v4 = vpop.f32.mrf.mxu2  ;;  %v3375_v2 = vpop.f32.mrf.mxu3 }
 0x224   : > { %v1027_v28 = vpop.f32.mrf.mxu0  ;;  %v1076_v49 = vpop.f32.mrf.mxu1 }
 0x225   : > { %v1028_v24 = vadd.f32 %v1027_v28, %v3300_v37  ;;  %v1075_v28 = vadd.f32 %v3362_v62, %v3294_v42 }
 0x228   : > { %v3399_v46 = vpop.f32.mrf.mxu2  ;;  %v3401_v47 = vpop.f32.mrf.mxu3 }
 0x22c   : > { %v1030_v17 = vpop.f32.mrf.mxu0  ;;  %v1079_v0 = vpop.f32.mrf.mxu1 }
 0x22d   : > { %v1031_v25 = vadd.f32 %v1030_v17, %v3284_v43  ;;  %v1080_v40 = vadd.f32 %v1079_v0, %v3284_v43  ;;  %v1077_v0 = vadd.f32 %v1076_v49, %v3300_v37  ;;  %v1023_v49 = vadd.f32 %v3348_v13, %v3312_v26 }
 0x22f   : > { %2292 = vtanh.f32 %v1031_v25 }
 0x230   : > { %v1125_v61 = vpop.f32.mrf.mxu2  ;;  %v3435_v45 = vpop.f32.mrf.mxu3  ;;  %2294 = vtanh.f32 %v1080_v40 }
 0x234   : > { %v1032_v10 = vpop.f32.mrf.mxu0  ;;  %v1081_v31 = vpop.f32.mrf.mxu1 }
 0x235   : > { %v1033_v17 = vadd.f32 %v1032_v10, %v3306_v3  ;;  %v1082_v14 = vadd.f32 %v1081_v31, %v3306_v3  ;;  %v3463_v31 = vpop.eup %2288 }
 0x236   : > { %v3467_v40 = vpop.eup %2290 }
 0x237   : > { %2296 = vtanh.f32 %v1033_v17  ;;  %v2293_v17 = vpop.eup %2292 }
 0x238   : > { %2298 = vtanh.f32 %v1082_v14  ;;  %v1128_v25 = vpop.f32.mrf.mxu2  ;;  %v1177_v10 = vpop.f32.mrf.mxu3  ;;  %v1070_v14 = vadd.f32 %v3336_v11, %v3320_v53  ;;  %v1126_v11 = vadd.f32 %v1125_v61, %v3300_v37  ;;  %v1173_v61 = vadd.f32 %v3401_v47, %v3294_v42 }
 0x239   : > { %2300 = vtanh.f32 %v1028_v24  ;;  %v2295_v62 = vpop.eup %2294  ;;  %v1129_v13 = vadd.f32 %v1128_v25, %v3284_v43  ;;  %v1178_v9 = vadd.f32 %v1177_v10, %v3284_v43  ;;  %v1175_v43 = vadd.f32 %v3435_v45, %v3300_v37 }
 0x23a   : > { %2302 = vtanh.f32 %v1077_v0  ;;  %v1124_v10 = vadd.f32 %v3399_v46, %v3294_v42  ;;  %v1168_v45 = vadd.f32 %v3356_v56, %v3320_v53  ;;  %v1263_v56 = vpack.c.bf16 %v3467_v40, %v3459_v36 }
 0x23b   : > { %2304 = vtanh.f32 %v1026_v8  ;;  %v1258_v36 = vpack.c.bf16 %v3447_v16, %v3443_v59  ;;  %v1155_v16 = vadd.f32 %v3292_v41, %v3344_v29  ;;  %v1254_v59 = vpack.c.bf16 %v3437_v6, %v3427_v34  ;;  %v3952_v6 = vld [vmem:[#allocation17_spill] sm:$0xff] }
 0x23c   : > { %2306 = vtanh.f32 %v1075_v28 }
 0x23d   : > { %v2297_v21 = vpop.eup %2296  ;;  %2308 = vtanh.f32 %v1023_v49 }
 0x23e   : > { %v2299_v24 = vpop.eup %2298  ;;  %2310 = vtanh.f32 %v1072_v48  ;;  %v1274_v22 = vpack.c.bf16 %v2297_v21, %v2293_v17 }
 0x23f   : > { %v2301_v0 = vpop.eup %2300  ;;  %2312 = vtanh.f32 %v1021_v1  ;;  %v1275_v7 = vpack.c.bf16 %v2299_v24, %v2295_v62  ;;  %v1116_v62 = vadd.f32 %v3340_v15, %v3338_v18 }
 0x240   : > { %v2303_v50 = vpop.eup %2302  ;;  %2314 = vtanh.f32 %v1070_v14  ;;  %v1130_v33 = vpop.f32.mrf.mxu2  ;;  %1438 = vmatpush.bf16.msra.mxu0 %v1274_v22  ;;  %v1163_v22 = vadd.f32 %v3330_v39, %v3314_v32  ;;  %v1109_v39 = vadd.f32 %v3302_v55, %v3326_v60 }
 0x241   : > { %v1179_v8 = vpop.f32.mrf.mxu3  ;;  %v2305_v63 = vpop.eup %2304  ;;  %2316 = vtanh.f32 %v1129_v13  ;;  %v1131_v28 = vadd.f32 %v1130_v33, %v3306_v3  ;;  %1487 = vmatpush.bf16.msra.mxu1 %v1275_v7  ;;  %v1121_v7 = vadd.f32 %v3373_v4, %v3312_v26  ;;  %v1158_v33 = vadd.f32 %v3304_v58, %v3326_v60 }
 0x242   : > { %v1180_v25 = vadd.f32 %v1179_v8, %v3306_v3  ;;  %v2307_v49 = vpop.eup %2306  ;;  %2318 = vtanh.f32 %v1178_v9  ;;  %v1270_v1 = vpack.c.bf16 %v2301_v0, %v2305_v63  ;;  %v1170_v63 = vadd.f32 %v3375_v2, %v3312_v26 }
 0x243   : > { %v2309_v21 = vpop.eup %2308  ;;  %2320 = vtanh.f32 %v1131_v28  ;;  %v1271_v48 = vpack.c.bf16 %v2303_v50, %v2307_v49  ;;  %v1119_v50 = vadd.f32 %v3354_v5, %v3320_v53  ;;  %v1165_v26 = vadd.f32 %v3342_v38, %v3338_v18 }
 0x244   : > { %v2311_v17 = vpop.eup %2310  ;;  %2322 = vtanh.f32 %v1180_v25  ;;  %1439 = vmatpush.bf16.msra.mxu0 %v1270_v1  ;;  %v1262_v5 = vpack.c.bf16 %v3463_v31, %v3455_v57  ;;  %v1114_v53 = vadd.f32 %v3328_v51, %v3314_v32  ;;  %v1111_v38 = vadd.f32 %v3316_v23, %v3332_v27  ;;  %v3953_v25 = vld [vmem:[#allocation30_spill] sm:$0xff] }
 0x245   : > { %v2313_v3 = vpop.eup %2312  ;;  %2324 = vtanh.f32 %v1126_v11  ;;  %1488 = vmatpush.bf16.msra.mxu1 %v1271_v48  ;;  %v1160_v57 = vadd.f32 %v3318_v52, %v3332_v27  ;;  %v1259_v23 = vpack.c.bf16 %v3452_v54, %v3445_v12  ;;  %v1106_v27 = vadd.f32 %v3290_v44, %v3344_v29  ;;  %v3950_v11 = vld [vmem:[#allocation31_spill] sm:$0xff]  ;;  %v3951_v29 = vld [vmem:[#allocation26_spill] sm:$0xff] }
 0x246   : > { %v2315_v9 = vpop.eup %2314  ;;  %2326 = vtanh.f32 %v1175_v43  ;;  %v1266_v37 = vpack.c.bf16 %v2309_v21, %v2313_v3  ;;  %v1104_v60 = vadd.f32 %v3280_v19, %v3352_v30  ;;  %v1255_v44 = vpack.c.bf16 %v3440_v35, %v3431_v20  ;;  %v3954_v20 = vld [vmem:[#allocation32_spill] sm:$0xff]  ;;  %v3955_v35 = vld [vmem:[#allocation21_spill] sm:$0xff]  ;;  %v3956_v21 = vld [vmem:[#allocation23_spill] sm:$0xff] }
 0x247   : > { %v2317_v46 = vpop.eup %2316  ;;  %2328 = vtanh.f32 %v1124_v10  ;;  %v1267_v42 = vpack.c.bf16 %v2311_v17, %v2315_v9  ;;  %v1153_v28 = vadd.f32 %v3950_v11, %v3352_v30  ;;  %v1101_v34 = vadd.f32 %v3952_v6, %v3951_v29  ;;  %v3957_v10 = vld [vmem:[#allocation22_spill] sm:$0xff]  ;;  %v3958_v17 = vld [vmem:[#allocation33_spill] sm:$0xff]  ;;  %v2203_v11 = vld [vmem:[%s3846_s5 + $0x10] sm:$0xff]  ;;  %v1313_v6 = vpop.permute.xlu2 %1312 }
 0x248   : > { %v2319_v47 = vpop.eup %2318  ;;  %2330 = vtanh.f32 %v1173_v61  ;;  %1440 = vmatpush.bf16.msra.mxu0 %v1266_v37  ;;  %v1150_v49 = vadd.f32 %v3953_v25, %v3951_v29  ;;  %v1250_v43 = vpack.c.bf16 %v3955_v35, %v3954_v20  ;;  %v1099_v48 = vadd.f32 %v3957_v10, %v3956_v21  ;;  %v3959_v61 = vld [vmem:[#allocation10_spill] sm:$0xff]  ;;  %v2207_v25 = vld [vmem:[%s3846_s5 + $0x30] sm:$0xff] }
 0x249   : > { %v2321_v4 = vpop.eup %2320  ;;  %2332 = vtanh.f32 %v1121_v7  ;;  %1489 = vmatpush.bf16.msra.mxu1 %v1267_v42  ;;  %v1251_v3 = vpack.c.bf16 %v3959_v61, %v3958_v17  ;;  %v3962_v42 = vld [vmem:[#allocation19_spill] sm:$0xff]  ;;  %v2206_v29 = vld [vmem:[%s3846_s5 + $0x28] sm:$0xff] }
 0x24a   : > { %v2323_v2 = vpop.eup %2322  ;;  %2334 = vtanh.f32 %v1170_v63  ;;  %v1276_v14 = vpack.c.bf16 %v2321_v4, %v2317_v46  ;;  %v3960_v63 = vld [vmem:[#allocation16_spill] sm:$0xff]  ;;  %v3963_v4 = vld [vmem:[#allocation29_spill] sm:$0xff] }
 0x24b   : > { %v2325_v13 = vpop.eup %2324  ;;  %2336 = vtanh.f32 %v1119_v50  ;;  %v1277_v15 = vpack.c.bf16 %v2323_v2, %v2319_v47  ;;  %v1148_v37 = vadd.f32 %v3960_v63, %v3956_v21  ;;  %v3961_v50 = vld [vmem:[#allocation15_spill] sm:$0xff] }
 0x24c   : > { %v2327_v24 = vpop.eup %2326  ;;  %2338 = vtanh.f32 %v1168_v45  ;;  %1441 = vmatpush.bf16.msra.mxu0 %v1262_v5  ;;  %1536 = vmatpush.bf16.msra.mxu2 %v1276_v14  ;;  %v1096_v47 = vadd.f32 %v3962_v42, %v3961_v50  ;;  %v3964_v2 = vld [vmem:[#allocation27_spill] sm:$0xff] }
 0x24d   : > { %v2329_v18 = vpop.eup %2328  ;;  %2340 = vtanh.f32 %v1116_v62  ;;  %1490 = vmatpush.bf16.msra.mxu1 %v1263_v56  ;;  %1585 = vmatpush.bf16.msra.mxu3 %v1277_v15  ;;  %v1145_v62 = vadd.f32 %v3963_v4, %v3961_v50  ;;  %v3967_v56 = vld [vmem:[#allocation20_spill] sm:$0xff] }
 0x24e   : > { %v2331_v51 = vpop.eup %2330  ;;  %2342 = vtanh.f32 %v1165_v26  ;;  %v1272_v31 = vpack.c.bf16 %v2325_v13, %v2329_v18  ;;  %v3965_v26 = vld [vmem:[#allocation12_spill] sm:$0xff] }
 0x24f   : > { %v2333_v32 = vpop.eup %2332  ;;  %2344 = vtanh.f32 %v1114_v53  ;;  %v1273_v40 = vpack.c.bf16 %v2327_v24, %v2331_v51  ;;  %v1246_v5 = vpack.c.bf16 %v3965_v26, %v3964_v2  ;;  %v3966_v53 = vld [vmem:[#allocation14_spill] sm:$0xff]  ;;  %v3968_v24 = vld [vmem:[#allocation28_spill] sm:$0xff]  ;;  %v2201_v51 = vld [vmem:[%s3846_s5] sm:$0xff] }
 0x250   : > { %v2335_v0 = vpop.eup %2334  ;;  %2346 = vtanh.f32 %v1163_v22  ;;  %1442 = vmatpush.bf16.msra.mxu0 %v1258_v36  ;;  %1537 = vmatpush.bf16.msra.mxu2 %v1272_v31  ;;  %v1094_v15 = vadd.f32 %v3967_v56, %v3966_v53  ;;  %v3969_v22 = vld [vmem:[#allocation13_spill] sm:$0xff]  ;;  %v3970_v36 = vld [vmem:[#allocation18_spill] sm:$0xff] }
 0x251   : > { %v2337_v52 = vpop.eup %2336  ;;  %2348 = vtanh.f32 %v1111_v38  ;;  %1491 = vmatpush.bf16.msra.mxu1 %v1259_v23  ;;  %1586 = vmatpush.bf16.msra.mxu3 %v1273_v40  ;;  %v1247_v18 = vpack.c.bf16 %v3969_v22, %v3968_v24  ;;  %v1143_v31 = vadd.f32 %v3970_v36, %v3966_v53 }
 0x252   : > { %v2339_v55 = vpop.eup %2338  ;;  %2350 = vtanh.f32 %v1160_v57  ;;  %v1268_v12 = vpack.c.bf16 %v2333_v32, %v2337_v52 }
 0x253   : > { %v2341_v58 = vpop.eup %2340  ;;  %2352 = vtanh.f32 %v1109_v39  ;;  %v1269_v54 = vpack.c.bf16 %v2335_v0, %v2339_v55 }
 0x254   : > { %v2343_v8 = vpop.eup %2342  ;;  %2354 = vtanh.f32 %v1158_v33  ;;  %1443 = vmatpush.bf16.msra.mxu0 %v1254_v59  ;;  %1538 = vmatpush.bf16.msra.mxu2 %v1268_v12 }
 0x255   : > { %v2345_v41 = vpop.eup %2344  ;;  %2356 = vtanh.f32 %v1106_v27  ;;  %1492 = vmatpush.bf16.msra.mxu1 %v1255_v44  ;;  %1587 = vmatpush.bf16.msra.mxu3 %v1269_v54 }
 0x256   : > { %v2347_v19 = vpop.eup %2346  ;;  %2358 = vtanh.f32 %v1155_v16  ;;  %v1264_v1 = vpack.c.bf16 %v2341_v58, %v2345_v41  ;;  %v2205_v41 = vld [vmem:[%s3846_s5 + $0x20] sm:$0xff] }
 0x257   : > { %v2349_v30 = vpop.eup %2348  ;;  %2360 = vtanh.f32 %v1104_v60  ;;  %v1265_v7 = vpack.c.bf16 %v2343_v8, %v2347_v19  ;;  %v2202_v8 = vld [vmem:[%s3846_s5 + $0x8] sm:$0xff]  ;;  %v3574_v19 = vpop.permute.xlu0 %1317 }
 0x258   : > { %v2351_v9 = vpop.eup %2350  ;;  %2362 = vtanh.f32 %v1153_v28  ;;  %1444 = vmatpush.bf16.msra.mxu0 %v1250_v43  ;;  %1539 = vmatpush.bf16.msra.mxu2 %v1264_v1  ;;  %v2204_v28 = vld [vmem:[%s3846_s5 + $0x18] sm:$0xff] }
 0x259   : > { %v2353_v46 = vpop.eup %2352  ;;  %2364 = vtanh.f32 %v1101_v34  ;;  %1493 = vmatpush.bf16.msra.mxu1 %v1251_v3  ;;  %1588 = vmatpush.bf16.msra.mxu3 %v1265_v7  ;;  %v3572_v34 = vpop.permute.xlu1 %1322  ;;  %v2208_v43 = vld [vmem:[%s3846_s5 + $0x38] sm:$0xff] }
 0x25a   : > { %v2355_v45 = vpop.eup %2354  ;;  %2366 = vtanh.f32 %v1150_v49  ;;  %v1260_v14 = vpack.c.bf16 %v2349_v30, %v2353_v46  ;;  %v3579_v49 = vpop.permute.xlu2 %1327 }
 0x25b   : > { %v2357_v13 = vpop.eup %2356  ;;  %2368 = vtanh.f32 %v1099_v48  ;;  %v1261_v38 = vpack.c.bf16 %v2351_v9, %v2355_v45 }
 0x25c   : > { %v2359_v57 = vpop.eup %2358  ;;  %2370 = vtanh.f32 %v1148_v37  ;;  %1445 = vmatpush.bf16.msra.mxu0 %v1246_v5  ;;  %1540 = vmatpush.bf16.msra.mxu2 %v1260_v14 }
 0x25d   : > { %v2361_v32 = vpop.eup %2360  ;;  %2372 = vtanh.f32 %v1096_v47  ;;  %1494 = vmatpush.bf16.msra.mxu1 %v1247_v18  ;;  %1589 = vmatpush.bf16.msra.mxu3 %v1261_v38 }
 0x25e   : > { %v2363_v39 = vpop.eup %2362  ;;  %2374 = vtanh.f32 %v1145_v62  ;;  %v1256_v23 = vpack.c.bf16 %v2357_v13, %v2361_v32 }
 0x25f   : > { %v2365_v40 = vpop.eup %2364  ;;  %2376 = vtanh.f32 %v1094_v15  ;;  %1446 = vmatmul.bf16.vlgmr.msra.gmra.mxu0 %v2201_v51  ;;  %v1257_v0 = vpack.c.bf16 %v2359_v57, %v2363_v39  ;;  %v3583_v35 = vpop.permute.xlu0 %1332 }
 0x260   : > { %v2367_v33 = vpop.eup %2366  ;;  %2378 = vtanh.f32 %v1143_v31  ;;  %1495 = vmatmul.bf16.vlgmr.msra.gmra.mxu1 %v2201_v51  ;;  %1541 = vmatpush.bf16.msra.mxu2 %v1256_v23 }
 0x261   : > { %v2369_v52 = vpop.eup %2368  ;;  %1590 = vmatpush.bf16.msra.mxu3 %v1257_v0  ;;  %v3581_v20 = vpop.permute.xlu1 %1337 }
 0x262   : > { %v2371_v27 = vpop.eup %2370  ;;  %v1252_v55 = vpack.c.bf16 %v2365_v40, %v2369_v52  ;;  %v3588_v1 = vpop.permute.xlu2 %1342 }
 0x263   : > { %v2373_v16 = vpop.eup %2372  ;;  %v1253_v59 = vpack.c.bf16 %v2367_v33, %v2371_v27 }
 0x264   : > { %v2375_v12 = vpop.eup %2374  ;;  %1542 = vmatpush.bf16.msra.mxu2 %v1252_v55 }
 0x265   : > { %v2377_v58 = vpop.eup %2376  ;;  %1591 = vmatpush.bf16.msra.mxu3 %v1253_v59 }
 0x266   : > { %v2379_v60 = vpop.eup %2378  ;;  %v1248_v44 = vpack.c.bf16 %v2373_v16, %v2377_v58 }
 0x267   : > { %v1249_v54 = vpack.c.bf16 %v2375_v12, %v2379_v60  ;;  %v3592_v21 = vpop.permute.xlu0 %1347 }
 0x268   : > { %1543 = vmatpush.bf16.msra.mxu2 %v1248_v44 }
 0x269   : > { %1592 = vmatpush.bf16.msra.mxu3 %v1249_v54  ;;  %v3590_v30 = vpop.permute.xlu1 %1352 }
 0x26a   : > { %v3594_v10 = vpop.permute.xlu2 %1357 }
 0x26b   : > { %1544 = vmatmul.bf16.vlgmr.msra.gmra.mxu2 %v2201_v51 }
 0x26c   : > { %1593 = vmatmul.bf16.vlgmr.msra.gmra.mxu3 %v2201_v51 }
 0x26f   : > { %1451 = vmatmul.bf16.gmra.mxu0 %v2202_v8  ;;  %v3598_v17 = vpop.permute.xlu0 %1362 }
 0x270   : > { %1500 = vmatmul.bf16.gmra.mxu1 %v2202_v8 }
 0x271   : > { %v3596_v48 = vpop.permute.xlu1 %1367 }
 0x272   : > { %v3600_v7 = vpop.permute.xlu2 %1372 }
 0x277   : > { %v3604_v46 = vpop.permute.xlu0 %1377 }
 0x279   : > { %v3602_v63 = vpop.permute.xlu1 %1382 }
 0x27a   : > { %v3608_v62 = vpop.permute.xlu2 %1387 }
 0x27b   : > { %1549 = vmatmul.bf16.gmra.mxu2 %v2202_v8 }
 0x27c   : > { %1598 = vmatmul.bf16.gmra.mxu3 %v2202_v8 }
 0x27f   : > { %1456 = vmatmul.bf16.gmra.mxu0 %v2203_v11  ;;  %v1717_v13 = vpop.permute.xlu0 %1716 }
 0x280   : > { %1505 = vmatmul.bf16.gmra.mxu1 %v2203_v11 }
 0x281   : > { %v3610_v26 = vpop.permute.xlu1 %1721 }
 0x282   : > { %v3616_v33 = vpop.permute.xlu2 %1726 }
 0x28b   : > { %1554 = vmatmul.bf16.gmra.mxu2 %v2203_v11 }
 0x28c   : > { %1603 = vmatmul.bf16.gmra.mxu3 %v2203_v11 }
 0x28f   : > { %1461 = vmatmul.bf16.gmra.mxu0 %v2204_v28 }
 0x290   : > { %1510 = vmatmul.bf16.gmra.mxu1 %v2204_v28 }
 0x29b   : > { %1559 = vmatmul.bf16.gmra.mxu2 %v2204_v28 }
 0x29c   : > { %1608 = vmatmul.bf16.gmra.mxu3 %v2204_v28 }
 0x29f   : > { %1466 = vmatmul.bf16.gmra.mxu0 %v2205_v41 }
 0x2a0   : > { %1515 = vmatmul.bf16.gmra.mxu1 %v2205_v41 }
 0x2ab   : > { %1564 = vmatmul.bf16.gmra.mxu2 %v2205_v41 }
 0x2ac   : > { %1613 = vmatmul.bf16.gmra.mxu3 %v2205_v41 }
 0x2af   : > { %1471 = vmatmul.bf16.gmra.mxu0 %v2206_v29 }
 0x2b0   : > { %1520 = vmatmul.bf16.gmra.mxu1 %v2206_v29 }
 0x2bb   : > { %1569 = vmatmul.bf16.gmra.mxu2 %v2206_v29 }
 0x2bc   : > { %1618 = vmatmul.bf16.gmra.mxu3 %v2206_v29 }
 0x2bf   : > { %1476 = vmatmul.bf16.gmra.mxu0 %v2207_v25 }
 0x2c0   : > { %1525 = vmatmul.bf16.gmra.mxu1 %v2207_v25 }
 0x2cb   : > { %1574 = vmatmul.bf16.gmra.mxu2 %v2207_v25 }
 0x2cc   : > { %1623 = vmatmul.bf16.gmra.mxu3 %v2207_v25  ;;  %v1732_v25 = vpop.permute.xlu0 %1731 }
 0x2cf   : > { %1481 = vmatmul.bf16.gmra.mxu0 %v2208_v43 }
 0x2d0   : > { %1530 = vmatmul.bf16.gmra.mxu1 %v2208_v43 }
 0x2db   : > { %1579 = vmatmul.bf16.gmra.mxu2 %v2208_v43 }
 0x2dc   : > { %1628 = vmatmul.bf16.gmra.mxu3 %v2208_v43  ;;  %v1447_v61 = vpop.f32.mrf.mxu0 }
 0x2dd   : > { %v1496_v3 = vpop.f32.mrf.mxu1  ;;  %v1448_v9 = vadd.f32 %v1447_v61, %v1313_v6 }
 0x2de   : > { %v1497_v37 = vadd.f32 %v1496_v3, %v1313_v6 }
 0x2df   : > { %2380 = vtanh.f32 %v1448_v9 }
 0x2e0   : > { %2382 = vtanh.f32 %v1497_v37 }
 0x2e4   : > { %v1449_v50 = vpop.f32.mrf.mxu0 }
 0x2e5   : > { %v1450_v42 = vadd.f32 %v1449_v50, %v3574_v19  ;;  %v1498_v47 = vpop.f32.mrf.mxu1  ;;  %v2381_v4 = vpop.eup %2380 }
 0x2e6   : > { %v1499_v45 = vadd.f32 %v1498_v47, %v3574_v19  ;;  %v2383_v2 = vpop.eup %2382  ;;  %v1794_v24 = vmul.f32 %v2381_v4, %v1717_v13 }
 0x2e7   : > { %2384 = vtanh.f32 %v1450_v42  ;;  %v1795_v51 = vmul.f32 %v2383_v2, %v1717_v13 }
 0x2e8   : > { %2386 = vtanh.f32 %v1499_v45 }
 0x2ec   : > { %v1452_v5 = vpop.f32.mrf.mxu0 }
 0x2ed   : > { %v2385_v14 = vpop.eup %2384  ;;  %v1453_v53 = vadd.f32 %v1452_v5, %v3572_v34  ;;  %v1501_v56 = vpop.f32.mrf.mxu1 }
 0x2ee   : > { %v2387_v15 = vpop.eup %2386  ;;  %v1798_v22 = vmul.f32 %v2385_v14, %v3610_v26  ;;  %v1502_v18 = vadd.f32 %v1501_v56, %v3572_v34  ;;  %v1545_v38 = vpop.f32.mrf.mxu2 }
 0x2ef   : > { %v1799_v57 = vmul.f32 %v2387_v15, %v3610_v26  ;;  %2388 = vtanh.f32 %v1453_v53  ;;  %v1594_v36 = vpop.f32.mrf.mxu3  ;;  %v1546_v39 = vadd.f32 %v1545_v38, %v1313_v6 }
 0x2f0   : > { %v1858_v31 = vadd.f32 %v1798_v22, %v1794_v24  ;;  %2390 = vtanh.f32 %v1502_v18  ;;  %v1595_v23 = vadd.f32 %v1594_v36, %v1313_v6 }
 0x2f1   : > { %v1879_v32 = vadd.f32 %v1799_v57, %v1795_v51  ;;  %2392 = vtanh.f32 %v1546_v39  ;;  %v1737_v57 = vpop.permute.xlu1 %1736 }
 0x2f2   : > { %2394 = vtanh.f32 %v1595_v23 }
 0x2f4   : > { %v1454_v40 = vpop.f32.mrf.mxu0 }
 0x2f5   : > { %v2389_v0 = vpop.eup %2388  ;;  %v1455_v52 = vadd.f32 %v1454_v40, %v3579_v49  ;;  %v1503_v27 = vpop.f32.mrf.mxu1 }
 0x2f6   : > { %v2391_v55 = vpop.eup %2390  ;;  %v1802_v16 = vmul.f32 %v2389_v0, %v3616_v33  ;;  %v1504_v59 = vadd.f32 %v1503_v27, %v3579_v49  ;;  %v1547_v12 = vpop.f32.mrf.mxu2 }
 0x2f7   : > { %v1803_v58 = vmul.f32 %v2391_v55, %v3616_v33  ;;  %2396 = vtanh.f32 %v1455_v52  ;;  %v1548_v60 = vadd.f32 %v1547_v12, %v3574_v19  ;;  %v1596_v44 = vpop.f32.mrf.mxu3  ;;  %v2393_v28 = vpop.eup %2392 }
 0x2f8   : > { %v1859_v54 = vadd.f32 %v1858_v31, %v1802_v16  ;;  %2398 = vtanh.f32 %v1504_v59  ;;  %v1597_v8 = vadd.f32 %v1596_v44, %v3574_v19  ;;  %v2395_v41 = vpop.eup %2394  ;;  %v1796_v47 = vmul.f32 %v2393_v28, %v1717_v13 }
 0x2f9   : > { %v1880_v11 = vadd.f32 %v1879_v32, %v1803_v58  ;;  %2400 = vtanh.f32 %v1548_v60  ;;  %v1797_v56 = vmul.f32 %v2395_v41, %v1717_v13 }
 0x2fa   : > { %2402 = vtanh.f32 %v1597_v8 }
 0x2fc   : > { %v1457_v29 = vpop.f32.mrf.mxu0 }
 0x2fd   : > { %v2397_v6 = vpop.eup %2396  ;;  %v1458_v43 = vadd.f32 %v1457_v29, %v3583_v35  ;;  %v1506_v61 = vpop.f32.mrf.mxu1 }
 0x2fe   : > { %v2399_v3 = vpop.eup %2398  ;;  %v1806_v9 = vmul.f32 %v2397_v6, %v1732_v25  ;;  %v1507_v37 = vadd.f32 %v1506_v61, %v3583_v35  ;;  %v1550_v50 = vpop.f32.mrf.mxu2 }
 0x2ff   : > { %v2401_v42 = vpop.eup %2400  ;;  %v1807_v45 = vmul.f32 %v2399_v3, %v1732_v25  ;;  %2404 = vtanh.f32 %v1458_v43  ;;  %v1551_v19 = vadd.f32 %v1550_v50, %v3572_v34  ;;  %v1599_v4 = vpop.f32.mrf.mxu3 }
 0x300   : > { %v2403_v2 = vpop.eup %2402  ;;  %v1860_v5 = vadd.f32 %v1859_v54, %v1806_v9  ;;  %v1800_v14 = vmul.f32 %v2401_v42, %v3610_v26  ;;  %2406 = vtanh.f32 %v1507_v37  ;;  %v1600_v53 = vadd.f32 %v1599_v4, %v3572_v34 }
 0x301   : > { %v1881_v15 = vadd.f32 %v1880_v11, %v1807_v45  ;;  %v1801_v24 = vmul.f32 %v2403_v2, %v3610_v26  ;;  %2408 = vtanh.f32 %v1551_v19 }
 0x302   : > { %v1900_v22 = vadd.f32 %v1800_v14, %v1796_v47  ;;  %2410 = vtanh.f32 %v1600_v53 }
 0x303   : > { %v1921_v18 = vadd.f32 %v1801_v24, %v1797_v56 }
 0x304   : > { %v1459_v38 = vpop.f32.mrf.mxu0 }
 0x305   : > { %v2405_v51 = vpop.eup %2404  ;;  %v1508_v36 = vpop.f32.mrf.mxu1 }
 0x306   : > { %v2407_v31 = vpop.eup %2406  ;;  %v1810_v32 = vmul.f32 %v2405_v51, %v1737_v57  ;;  %v1552_v39 = vpop.f32.mrf.mxu2 }
 0x307   : > { %v2409_v23 = vpop.eup %2408  ;;  %v1811_v40 = vmul.f32 %v2407_v31, %v1737_v57  ;;  %v1553_v0 = vadd.f32 %v1552_v39, %v3579_v49  ;;  %v1601_v34 = vpop.f32.mrf.mxu3  ;;  %v1460_v31 = vadd.f32 %v1459_v38, %v3581_v20  ;;  %v1509_v39 = vadd.f32 %v1508_v36, %v3581_v20 }
 0x308   : > { %v2411_v13 = vpop.eup %2410  ;;  %v3631_v52 = vadd.f32 %v1860_v5, %v1810_v32  ;;  %v1804_v26 = vmul.f32 %v2409_v23, %v3616_v33  ;;  %v1602_v27 = vadd.f32 %v1601_v34, %v3579_v49 }
 0x309   : > { %v3635_v55 = vadd.f32 %v1881_v15, %v1811_v40  ;;  %v1805_v16 = vmul.f32 %v2411_v13, %v3616_v33  ;;  %2412 = vtanh.f32 %v1553_v0  ;;  %v3661_v13 = vpop.permute.xlu2 %1741 }
 0x30a   : > { %v1901_v59 = vadd.f32 %v1900_v22, %v1804_v26  ;;  %2414 = vtanh.f32 %v1602_v27 }
 0x30b   : > { %v1922_v12 = vadd.f32 %v1921_v18, %v1805_v16 }
 0x30c   : > { %v1462_v58 = vpop.f32.mrf.mxu0 }
 0x30d   : > { %v1511_v60 = vpop.f32.mrf.mxu1  ;;  %v1463_v40 = vadd.f32 %v1462_v58, %v3588_v1  ;;  %v3669_v58 = vpop.permute.xlu0 %1746 }
 0x30e   : > { %v1555_v44 = vpop.f32.mrf.mxu2  ;;  %v1512_v0 = vadd.f32 %v1511_v60, %v3588_v1 }
 0x30f   : > { %v2413_v54 = vpop.eup %2412  ;;  %v1556_v8 = vadd.f32 %v1555_v44, %v3583_v35  ;;  %v1604_v11 = vpop.f32.mrf.mxu3 }
 0x310   : > { %v2415_v28 = vpop.eup %2414  ;;  %v1808_v41 = vmul.f32 %v2413_v54, %v1732_v25  ;;  %v1605_v29 = vadd.f32 %v1604_v11, %v3583_v35 }
 0x311   : > { %v1809_v49 = vmul.f32 %v2415_v28, %v1732_v25  ;;  %2416 = vtanh.f32 %v1556_v8 }
 0x312   : > { %v1902_v6 = vadd.f32 %v1901_v59, %v1808_v41  ;;  %2418 = vtanh.f32 %v1605_v29 }
 0x313   : > { %v1923_v33 = vadd.f32 %v1922_v12, %v1809_v49  ;;  %2420 = vtanh.f32 %v1460_v31  ;;  %v3677_v49 = vpop.permute.xlu1 %1751 }
 0x314   : > { %v1464_v43 = vpop.f32.mrf.mxu0  ;;  %2422 = vtanh.f32 %v1509_v39 }
 0x315   : > { %v1513_v61 = vpop.f32.mrf.mxu1  ;;  %v1465_v34 = vadd.f32 %v1464_v43, %v3592_v21  ;;  %2424 = vtanh.f32 %v1463_v40 }
 0x316   : > { %v1557_v3 = vpop.f32.mrf.mxu2  ;;  %v1514_v26 = vadd.f32 %v1513_v61, %v3592_v21  ;;  %2426 = vtanh.f32 %v1512_v0  ;;  %v3698_v0 = vpop.permute.xlu0 %1761 }
 0x317   : > { %v2417_v9 = vpop.eup %2416  ;;  %v1606_v37 = vpop.f32.mrf.mxu3  ;;  %v1558_v38 = vadd.f32 %v1557_v3, %v3581_v20  ;;  %2428 = vtanh.f32 %v1465_v34 }
 0x318   : > { %v2419_v50 = vpop.eup %2418  ;;  %v1812_v42 = vmul.f32 %v2417_v9, %v1737_v57  ;;  %v1607_v36 = vadd.f32 %v1606_v37, %v3581_v20  ;;  %2430 = vtanh.f32 %v1514_v26  ;;  %v3682_v37 = vpop.permute.xlu2 %1756 }
 0x319   : > { %v1813_v47 = vmul.f32 %v2419_v50, %v1737_v57  ;;  %v2421_v54 = vpop.eup %2420  ;;  %2432 = vtanh.f32 %v1558_v38 }
 0x31a   : > { %v3640_v45 = vadd.f32 %v1902_v6, %v1812_v42  ;;  %v2423_v11 = vpop.eup %2422  ;;  %2434 = vtanh.f32 %v1607_v36  ;;  %v1814_v6 = vmul.f32 %v2421_v54, %v3661_v13 }
 0x31b   : > { %v3642_v19 = vadd.f32 %v1923_v33, %v1813_v47  ;;  %v2425_v28 = vpop.eup %2424  ;;  %v1815_v47 = vmul.f32 %v2423_v11, %v3661_v13 }
 0x31c   : > { %v1467_v4 = vpop.f32.mrf.mxu0  ;;  %v2427_v29 = vpop.eup %2426 }
 0x31d   : > { %v1516_v2 = vpop.f32.mrf.mxu1  ;;  %v1468_v59 = vadd.f32 %v1467_v4, %v3590_v30  ;;  %v2429_v43 = vpop.eup %2428  ;;  %v1818_v4 = vmul.f32 %v2425_v28, %v3669_v58  ;;  %v1819_v31 = vmul.f32 %v2427_v29, %v3669_v58 }
 0x31e   : > { %v1560_v35 = vpop.f32.mrf.mxu2  ;;  %v1517_v60 = vadd.f32 %v1516_v2, %v3590_v30  ;;  %v2431_v9 = vpop.eup %2430  ;;  %v1822_v39 = vmul.f32 %v2429_v43, %v3677_v49 }
 0x31f   : > { %v1609_v25 = vpop.f32.mrf.mxu3  ;;  %v1561_v8 = vadd.f32 %v1560_v35, %v3588_v1  ;;  %2436 = vtanh.f32 %v1468_v59  ;;  %v2433_v42 = vpop.eup %2432  ;;  %v1823_v59 = vmul.f32 %v2431_v9, %v3677_v49 }
 0x320   : > { %v1610_v20 = vadd.f32 %v1609_v25, %v3588_v1  ;;  %2438 = vtanh.f32 %v1517_v60  ;;  %v2435_v25 = vpop.eup %2434  ;;  %v3706_v28 = vpop.permute.xlu1 %1766 }
 0x321   : > { %2440 = vtanh.f32 %v1561_v8 }
 0x322   : > { %2442 = vtanh.f32 %v1610_v20 }
 0x324   : > { %v1469_v5 = vpop.f32.mrf.mxu0 }
 0x325   : > { %v1518_v14 = vpop.f32.mrf.mxu1  ;;  %v1470_v41 = vadd.f32 %v1469_v5, %v3594_v10  ;;  %v1862_v5 = vadd.f32 %v3631_v52, %v1814_v6 }
 0x326   : > { %v1562_v53 = vpop.f32.mrf.mxu2  ;;  %v1519_v33 = vadd.f32 %v1518_v14, %v3594_v10 }
 0x327   : > { %v3644_v56 = vpop.f32.mrf.mxu3  ;;  %v1563_v61 = vadd.f32 %v1562_v53, %v3592_v21  ;;  %2444 = vtanh.f32 %v1470_v41  ;;  %v1863_v26 = vadd.f32 %v1862_v5, %v1818_v4 }
 0x328   : > { %2446 = vtanh.f32 %v1519_v33 }
 0x329   : > { %2448 = vtanh.f32 %v1563_v61  ;;  %v1864_v8 = vadd.f32 %v1863_v26, %v1822_v39 }
 0x32c   : > { %v1472_v15 = vpop.f32.mrf.mxu0 }
 0x32d   : > { %v1521_v24 = vpop.f32.mrf.mxu1  ;;  %v1473_v1 = vadd.f32 %v1472_v15, %v3598_v17  ;;  %v2437_v15 = vpop.eup %2436 }
 0x32e   : > { %v3646_v22 = vpop.f32.mrf.mxu2  ;;  %v1522_v2 = vadd.f32 %v1521_v24, %v3598_v17  ;;  %v2439_v24 = vpop.eup %2438  ;;  %v1826_v33 = vmul.f32 %v2437_v15, %v3682_v37 }
 0x32f   : > { %v3648_v18 = vpop.f32.mrf.mxu3  ;;  %2450 = vtanh.f32 %v1473_v1  ;;  %v2441_v34 = vpop.eup %2440  ;;  %v1827_v43 = vmul.f32 %v2439_v24, %v3682_v37  ;;  %v1566_v5 = vadd.f32 %v3646_v22, %v3590_v30 }
 0x330   : > { %2452 = vtanh.f32 %v1522_v2  ;;  %v2443_v36 = vpop.eup %2442  ;;  %v3718_v1 = vpop.permute.xlu2 %1771  ;;  %v1865_v39 = vadd.f32 %v1864_v8, %v1826_v33 }
 0x334   : > { %v1474_v51 = vpop.f32.mrf.mxu0 }
 0x335   : > { %v3650_v57 = vpop.f32.mrf.mxu1  ;;  %v1475_v14 = vadd.f32 %v1474_v51, %v3596_v48  ;;  %v1883_v51 = vadd.f32 %v3635_v55, %v1815_v47  ;;  %v1816_v55 = vmul.f32 %v2433_v42, %v3661_v13  ;;  %v1612_v42 = vadd.f32 %v3644_v56, %v3592_v21 }
 0x336   : > { %v3653_v32 = vpop.f32.mrf.mxu2  ;;  %v1524_v40 = vadd.f32 %v3650_v57, %v3596_v48  ;;  %v2445_v57 = vpop.eup %2444  ;;  %v1615_v21 = vadd.f32 %v3648_v18, %v3590_v30 }
 0x337   : > { %v3656_v23 = vpop.f32.mrf.mxu3  ;;  %2454 = vtanh.f32 %v1475_v14  ;;  %v1884_v54 = vadd.f32 %v1883_v51, %v1819_v31  ;;  %v2447_v20 = vpop.eup %2446  ;;  %v1830_v2 = vmul.f32 %v2445_v57, %v3698_v0  ;;  %v1904_v15 = vadd.f32 %v3640_v45, %v1816_v55 }
 0x338   : > { %2456 = vtanh.f32 %v1524_v40  ;;  %v3711_v6 = vpop.eup %2448  ;;  %v3741_v45 = vmul.f32 %v2443_v36, %v3669_v58  ;;  %v1568_v57 = vadd.f32 %v3653_v32, %v3594_v10 }
 0x339   : > { %v2451_v9 = vpop.eup %2450  ;;  %v1866_v30 = vadd.f32 %v1865_v39, %v1830_v2 }
 0x33a   : > { %v2453_v4 = vpop.eup %2452  ;;  %v1834_v24 = vmul.f32 %v2451_v9, %v3706_v28 }
 0x33c   : > { %v1477_v27 = vpop.f32.mrf.mxu0  ;;  %v1867_v8 = vadd.f32 %v1866_v30, %v1834_v24 }
 0x33d   : > { %v1526_v16 = vpop.f32.mrf.mxu1  ;;  %v1478_v52 = vadd.f32 %v1477_v27, %v3600_v7  ;;  %v2455_v14 = vpop.eup %2454 }
 0x33e   : > { %v3667_v12 = vpop.f32.mrf.mxu2  ;;  %v1527_v38 = vadd.f32 %v1526_v16, %v3600_v7  ;;  %v1817_v16 = vmul.f32 %v2435_v25, %v3661_v13  ;;  %v1820_v13 = vmul.f32 %v2441_v34, %v3669_v58  ;;  %v1831_v25 = vmul.f32 %v2447_v20, %v3698_v0  ;;  %v2457_v56 = vpop.eup %2456 }
 0x33f   : > { %v3672_v44 = vpop.f32.mrf.mxu3  ;;  %2458 = vtanh.f32 %v1478_v52  ;;  %v3736_v34 = vpop.permute.xlu0 %1776  ;;  %v1838_v26 = vmul.f32 %v2455_v14, %v3718_v1  ;;  %v1571_v32 = vadd.f32 %v3667_v12, %v3598_v17 }
 0x340   : > { %2460 = vtanh.f32 %v1527_v38  ;;  %v3731_v31 = vadd.f32 %v3642_v19, %v1817_v16  ;;  %v3738_v22 = vadd.f32 %v1904_v15, %v1820_v13  ;;  %v1835_v19 = vmul.f32 %v2453_v4, %v3706_v28  ;;  %v3761_v13 = vpop.permute.xlu2 %1786 }
 0x341   : > { %v1868_v9 = vadd.f32 %v1867_v8, %v1838_v26 }
 0x344   : > { %v1479_v3 = vpop.f32.mrf.mxu0 }
 0x345   : > { %v1528_v50 = vpop.f32.mrf.mxu1  ;;  %v1480_v60 = vadd.f32 %v1479_v3, %v3604_v46  ;;  %v2459_v52 = vpop.eup %2458 }
 0x346   : > { %v3688_v35 = vpop.f32.mrf.mxu2  ;;  %v1529_v11 = vadd.f32 %v1528_v50, %v3604_v46  ;;  %v1885_v50 = vadd.f32 %v1884_v54, %v1823_v59  ;;  %v2461_v51 = vpop.eup %2460 }
 0x347   : > { %v3692_v53 = vpop.f32.mrf.mxu3  ;;  %2462 = vtanh.f32 %v1480_v60  ;;  %v1839_v60 = vmul.f32 %v2457_v56, %v3718_v1  ;;  %v1843_v33 = vmul.f32 %v2461_v51, %v3736_v34  ;;  %v1573_v12 = vadd.f32 %v3688_v35, %v3596_v48 }
 0x348   : > { %2464 = vtanh.f32 %v1529_v11  ;;  %v1886_v40 = vadd.f32 %v1885_v50, %v1827_v43  ;;  %v1617_v11 = vadd.f32 %v3656_v23, %v3594_v10  ;;  %v1620_v10 = vadd.f32 %v3672_v44, %v3598_v17 }
 0x349   : > { %v1824_v56 = vmul.f32 %v3711_v6, %v3677_v49 }
 0x34a   : > { %v1887_v18 = vadd.f32 %v1886_v40, %v1831_v25 }
 0x34c   : > { %v1482_v27 = vpop.f32.mrf.mxu0 }
 0x34d   : > { %v1483_v41 = vadd.f32 %v1482_v27, %v3602_v63  ;;  %v1531_v29 = vpop.f32.mrf.mxu1  ;;  %v2463_v59 = vpop.eup %2462  ;;  %v1842_v27 = vmul.f32 %v2459_v52, %v3736_v34 }
 0x34e   : > { %v1532_v61 = vadd.f32 %v1531_v29, %v3602_v63  ;;  %v3716_v3 = vpop.f32.mrf.mxu2  ;;  %v2465_v54 = vpop.eup %2464  ;;  %v1888_v29 = vadd.f32 %v1887_v18, %v1835_v19 }
 0x34f   : > { %v3723_v47 = vpop.f32.mrf.mxu3  ;;  %2466 = vtanh.f32 %v1483_v41  ;;  %v3753_v41 = vpop.permute.xlu1 %1781  ;;  %v1869_v25 = vadd.f32 %v1868_v9, %v1842_v27 }
 0x350   : > { %2468 = vtanh.f32 %v1532_v61  ;;  %v1846_v23 = vmul.f32 %v2463_v59, %v3753_v41  ;;  %v1847_v4 = vmul.f32 %v2465_v54, %v3753_v41  ;;  %v1625_v39 = vadd.f32 %v3723_v47, %v3600_v7 }
 0x351   : > { %2470 = vtanh.f32 %v1612_v42  ;;  %v1889_v42 = vadd.f32 %v1888_v29, %v1839_v60 }
 0x352   : > { %2472 = vtanh.f32 %v1566_v5  ;;  %v1622_v5 = vadd.f32 %v3692_v53, %v3596_v48  ;;  %v1870_v35 = vadd.f32 %v1869_v25, %v1846_v23  ;;  %v3776_v48 = vpop.permute.xlu0 %1791 }
 0x353   : > { %2474 = vtanh.f32 %v1615_v21  ;;  %v1890_v14 = vadd.f32 %v1889_v42, %v1843_v33  ;;  %v1576_v21 = vadd.f32 %v3716_v3, %v3600_v7 }
 0x354   : > { %v1484_v38 = vpop.f32.mrf.mxu0 }
 0x355   : > { %v1485_v58 = vadd.f32 %v1484_v38, %v3608_v62  ;;  %v1533_v36 = vpop.f32.mrf.mxu1  ;;  %v2467_v16 = vpop.eup %2466  ;;  %v1891_v24 = vadd.f32 %v1890_v14, %v1847_v4 }
 0x356   : > { %v1534_v20 = vadd.f32 %v1533_v36, %v3608_v62  ;;  %v1577_v55 = vpop.f32.mrf.mxu2  ;;  %v2469_v61 = vpop.eup %2468  ;;  %v1850_v17 = vmul.f32 %v2467_v16, %v3761_v13 }
 0x357   : > { %2476 = vtanh.f32 %v1485_v58  ;;  %v1626_v43 = vpop.f32.mrf.mxu3  ;;  %v2471_v50 = vpop.eup %2470  ;;  %v1851_v15 = vmul.f32 %v2469_v61, %v3761_v13  ;;  %v1578_v52 = vadd.f32 %v1577_v55, %v3604_v46 }
 0x358   : > { %2478 = vtanh.f32 %v1534_v20  ;;  %v2473_v2 = vpop.eup %2472  ;;  %v1825_v53 = vmul.f32 %v2471_v50, %v3677_v49  ;;  %v1871_v3 = vadd.f32 %v1870_v35, %v1850_v17  ;;  %v1627_v6 = vadd.f32 %v1626_v43, %v3604_v46 }
 0x359   : > { %2480 = vtanh.f32 %v1568_v57  ;;  %v2475_v44 = vpop.eup %2474  ;;  %v1892_v26 = vadd.f32 %v1891_v24, %v1851_v15  ;;  %v1828_v59 = vmul.f32 %v2473_v2, %v3682_v37  ;;  %v1926_v46 = vadd.f32 %v3731_v31, %v3741_v45 }
 0x35a   : > { %2482 = vtanh.f32 %v1617_v11  ;;  %v1829_v36 = vmul.f32 %v2475_v44, %v3682_v37  ;;  %v1906_v11 = vadd.f32 %v3738_v22, %v1824_v56 }
 0x35b   : > { %2484 = vtanh.f32 %v1571_v32  ;;  %v1927_v16 = vadd.f32 %v1926_v46, %v1825_v53 }
 0x35c   : > { %2486 = vtanh.f32 %v1620_v10  ;;  %v1907_v32 = vadd.f32 %v1906_v11, %v1828_v59 }
 0x35d   : > { %v2477_v40 = vpop.eup %2476  ;;  %2488 = vtanh.f32 %v1573_v12  ;;  %v1928_v22 = vadd.f32 %v1927_v16, %v1829_v36 }
 0x35e   : > { %v2479_v19 = vpop.eup %2478  ;;  %2490 = vtanh.f32 %v1622_v5  ;;  %v1854_v51 = vmul.f32 %v2477_v40, %v3776_v48  ;;  %v1580_v30 = vpop.f32.mrf.mxu2 }
 0x35f   : > { %v2481_v18 = vpop.eup %2480  ;;  %2492 = vtanh.f32 %v1576_v21  ;;  %v1855_v7 = vmul.f32 %v2479_v19, %v3776_v48  ;;  %v1581_v47 = vadd.f32 %v1580_v30, %v3602_v63  ;;  %v1629_v49 = vpop.f32.mrf.mxu3  ;;  %v1943_v30 = vstv %s3793_s18  ;;  %s2528_s18 = scalar_lea.hbm %s3850_s9, 8 }
 0x360   : > { %v2483_v38 = vpop.eup %2482  ;;  %2494 = vtanh.f32 %v1625_v39  ;;  %v1872_v60 = vadd.f32 %v1871_v3, %v1854_v51  ;;  %v1630_v57 = vadd.f32 %v1629_v49, %v3602_v63  ;;  %v1832_v27 = vmul.f32 %v2481_v18, %v3698_v0  ;;  %p2530_p1 = scmp.lt.s32.totalorder %s2528_s18, %s2524_s26 }
 0x361   : > { %v2485_v58 = vpop.eup %2484  ;;  %v1893_v54 = vadd.f32 %v1892_v26, %v1855_v7  ;;  %2496 = vtanh.f32 %v1578_v52  ;;  %v1833_v29 = vmul.f32 %v2483_v38, %v3698_v0 }
 0x362   : > { %v2487_v8 = vpop.eup %2486  ;;  %v1873_v20 = vrot.slane %v1872_v60, 4  ;;  %2498 = vtanh.f32 %v1627_v6  ;;  %v1836_v31 = vmul.f32 %v2485_v58, %v3706_v28  ;;  %v1908_v10 = vadd.f32 %v1907_v32, %v1832_v27  ;;  %p2531_p2 = por %p2530_p1, %p2529_p0 }
 0x363   : > { %v2489_v55 = vpop.eup %2488  ;;  %v1894_v63 = vrot.slane %v1893_v54, 4  ;;  %2500 = vtanh.f32 %v1581_v47  ;;  %v1837_v43 = vmul.f32 %v2487_v8, %v3706_v28  ;;  %v1929_v4 = vadd.f32 %v1928_v22, %v1833_v29 }
 0x364   : > { %v2491_v33 = vpop.eup %2490  ;;  %v1874_v37 = vadd.f32 %v1873_v20, %v1872_v60  ;;  %2502 = vtanh.f32 %v1630_v57  ;;  %v1840_v23 = vmul.f32 %v2489_v55, %v3718_v1  ;;  %v1909_v44 = vadd.f32 %v1908_v10, %v1836_v31  ;;  %p2532_p3 = pnand %p2531_p2, %p2527_p13 }
 0x365   : > { %v2493_v45 = vpop.eup %2492  ;;  %v1895_v61 = vadd.f32 %v1894_v63, %v1893_v54  ;;  %v1841_v12 = vmul.f32 %v2491_v33, %v3718_v1  ;;  %v1930_v56 = vadd.f32 %v1929_v4, %v1837_v43  ;;  %v1966_v10 = vlaneseq }
 0x366   : > { %v2495_v9 = vpop.eup %2494  ;;  %v1875_v0 = vrot.slane %v1874_v37, 2  ;;  %v1582_v50 = vpop.f32.mrf.mxu2  ;;  %v1844_v14 = vmul.f32 %v2493_v45, %v3736_v34  ;;  %v1910_v1 = vadd.f32 %v1909_v44, %v1840_v23 }
 0x367   : > { %v2497_v42 = vpop.eup %2496  ;;  %v1896_v2 = vrot.slane %v1895_v61, 2  ;;  %v1583_v25 = vadd.f32 %v1582_v50, %v3608_v62  ;;  %v1631_v5 = vpop.f32.mrf.mxu3  ;;  %v1845_v35 = vmul.f32 %v2495_v9, %v3736_v34  ;;  %v1931_v52 = vadd.f32 %v1930_v56, %v1841_v12 }
 0x368   : > { %v2499_v17 = vpop.eup %2498  ;;  %v1876_v28 = vadd.f32 %v1875_v0, %v1874_v37  ;;  %v1632_v15 = vadd.f32 %v1631_v5, %v3608_v62  ;;  %v1848_v24 = vmul.f32 %v2497_v42, %v3753_v41  ;;  %v1911_v51 = vadd.f32 %v1910_v1, %v1844_v14 }
 0x369   : > { %v2501_v21 = vpop.eup %2500  ;;  %v1897_v39 = vadd.f32 %v1896_v2, %v1895_v61  ;;  %2504 = vtanh.f32 %v1583_v25  ;;  %v1849_v3 = vmul.f32 %v2499_v17, %v3753_v41  ;;  %v1932_v18 = vadd.f32 %v1931_v52, %v1845_v35 }
 0x36a   : > { %v2503_v40 = vpop.eup %2502  ;;  %v1877_v53 = vrot.slane %v1876_v28, 1  ;;  %2506 = vtanh.f32 %v1632_v15  ;;  %v1852_v62 = vmul.f32 %v2501_v21, %v3761_v13  ;;  %v1912_v7 = vadd.f32 %v1911_v51, %v1848_v24 }
 0x36b   : > { %v1898_v19 = vrot.slane %v1897_v39, 1  ;;  %v1853_v34 = vmul.f32 %v2503_v40, %v3761_v13  ;;  %v1933_v49 = vadd.f32 %v1932_v18, %v1849_v3  ;;  %vm1968_vm5 = vcmp.lt.s32.totalorder %v1966_v10, 512 }
 0x36c   : > { %v1878_v6 = vadd.f32 %v1877_v53, %v1876_v28  ;;  %v1913_v57 = vadd.f32 %v1912_v7, %v1852_v62 }
 0x36d   : > { %v1899_v26 = vadd.f32 %v1898_v19, %v1897_v39  ;;  %v1934_v46 = vadd.f32 %v1933_v49, %v1853_v34 }
 0x36e   : > { %v1944_v38 = vadd.f32 %v1943_v30, %v1878_v6 }
 0x36f   : > { %v2505_v47 = vpop.eup %2504  ;;  %v1945_v59 = vadd.f32 %v1943_v30, %v1899_v26 }
 0x370   : > { %v2507_v60 = vpop.eup %2506  ;;  %v1856_v58 = vmul.f32 %v2505_v47, %v3776_v48  ;;  %v1948_v11 = vmax.f32 %v1944_v38, 0.0 }
 0x371   : > { %v1857_v41 = vmul.f32 %v2507_v60, %v3776_v48  ;;  %v1949_v36 = vmax.f32 %v1945_v59, 0.0 }
 0x372   : > { %v1914_v54 = vadd.f32 %v1913_v57, %v1856_v58 }
 0x373   : > { %v1935_v8 = vadd.f32 %v1934_v46, %v1857_v41  ;;  %v1956_v13 = vrot.slane %v1949_v36, 7 }
 0x374   : > { %v1915_v27 = vrot.slane %v1914_v54, 4 }
 0x375   : > { %v1936_v20 = vrot.slane %v1935_v8, 4  ;;  %v1960_v55 = vsel %vm1959_vm2, %v1948_v11, %v1956_v13 }
 0x376   : > { %v1916_v16 = vadd.f32 %v1915_v27, %v1914_v54 }
 0x377   : > { %v1937_v29 = vadd.f32 %v1936_v20, %v1935_v8 }
 0x378   : > { %v1917_v63 = vrot.slane %v1916_v16, 2 }
 0x379   : > { %v1938_v33 = vrot.slane %v1937_v29, 2 }
 0x37a   : > { %v1918_v32 = vadd.f32 %v1917_v63, %v1916_v16 }
 0x37b   : > { %v1939_v31 = vadd.f32 %v1938_v33, %v1937_v29 }
 0x37c   : > { %v1919_v37 = vrot.slane %v1918_v32, 1 }
 0x37d   : > { %v1940_v48 = vrot.slane %v1939_v31, 1 }
 0x37e   : > { %v1920_v45 = vadd.f32 %v1919_v37, %v1918_v32 }
 0x37f   : > { %v1941_v22 = vadd.f32 %v1940_v48, %v1939_v31 }
 0x380   : > { %v1946_v43 = vadd.f32 %v1943_v30, %v1920_v45 }
 0x381   : > { %v1947_v61 = vadd.f32 %v1943_v30, %v1941_v22 }
 0x382   : > { %v1950_v9 = vmax.f32 %v1946_v43, 0.0 }
 0x383   : > { %v1951_v23 = vmax.f32 %v1947_v61, 0.0 }
 0x384   : > { %v1957_v0 = vrot.slane %v1950_v9, 6 }
 0x385   : > { %v1958_v50 = vrot.slane %v1951_v23, 5 }
 0x387   : > { %v1962_v42 = vsel %vm1961_vm3, %v1957_v0, %v1958_v50 }
 0x388   : > { %v1964_v4 = vsel %vm1963_vm4, %v1960_v55, %v1962_v42 }
 0x389   : > { %1970 = vst.msk [vmem:[%s327_s28] sm:$0xf] %vm1968_vm5, %v1964_v4 }
 0x38a   : > { %2535 = shalt.err (!%p2532_p3)
}
 0x38b   : > { %2209 = dma.vmem_to_hbm [thread:$0]  (%p2661_p5), %s1985_s29, 64, %s1987_s30, %s1972_s10  }
 0x38c PF: > { %p2215_p4 = scmp.ge.s32.totalorder %s2570_s14, 2  ;;  %s1998_s22 = sand.u32 1, %s2558_s11  }
 0x38d   : > { %s1999_s25 = scalar_lea.sflag [#allocation4], %s1998_s22 }
 0x38e   : > { %p2212_p7 = pnand %p2215_p4, %p2665_p6 }
 0x390   : > { %p2213_p8 = pneg %p2212_p7 }
 0x392   : > { %2553 = dma.done.wait (%p2213_p8), %s1999_s25, 64  }
 0x393   : > { %2555 = vsyncadd (%p2213_p8), %s1999_s25, 4294967232  ;;  %p20_p9 = scmp.ge.s32.totalorder %s2649_s16, 4   ;;  %s3971_s11 = smov %s2562_s12 }
 0x394   : > { %s3972_s12 = smov %s2566_s13  ;;  %s3973_s13 = smov %s2659_s19 }
 0x395   : > { %s3974_s14 = smov %s2649_s16  ;;  %22 = sbr.rel (!%p20_p9) target bundleno = 5 (0x5), region = 91 }
 0x39a   :  { %2005 = vsyncpa [#allocation4], 1 }
 0x39b   :  { %2007 = vsyncpa [#allocation4 + $0x1], 1 }

</bundles_post_ra>
